<compile_context>
chip_gen: v7x
topology: tpu7x:2x2x1
jax: 0.10.0
libtpu: 0.0.40
codegen_flags: <defaults>
</compile_context>

<pallas_src>
import functools
import math

import jax
import jax.numpy as jnp
from jax.experimental import pallas as pl
from jax.experimental.pallas import tpu as pltpu

KSIZE = 5  # convMultiHeadAttention.kernel_size


# ----------------------------- fused per-layer kernel -----------------------------
def _conv_attention_layer_kernel(
    x_ref,
    wqk_ref, bqk_ref, wvh_ref,
    w4a_ref, b4a_ref, w5a_ref, b5a_ref, ln1g_ref, ln1b_ref,
    wf1_ref, wf2_ref,
    w4b_ref, b4b_ref, w5b_ref, b5b_ref, ln2g_ref, ln2b_ref,
    out_ref,
    x_scr,
    *, block_b, seq_len, d_model, n_head,
):
    """One grid step = (batch block b, layer l).  x is carried across l in x_scr."""
    f32, bf16 = jnp.float32, jnp.bfloat16
    Bb, T, D = block_b, seq_len, d_model
    rows = Bb * T
    d_v = D // n_head
    scale = 1.0 / math.sqrt(d_v)
    l = pl.program_id(1)

    # Load the HBM activation block only once per batch block (first layer).
    @pl.when(l == 0)
    def _():
        x_scr[...] = x_ref[...].astype(f32)

    x2d = x_scr[...]                                    # (rows, D) f32 residual stream
    x_bf = x2d.astype(bf16)

    # ---- causal 5-tap conv for Q|K as a single im2col matmul (window built in bf16)
    x3 = x_bf.reshape(Bb, T, D)
    xpad = jnp.concatenate(
        [jnp.zeros((Bb, KSIZE - 1, D), bf16), x3], axis=1)          # (Bb, T+4, D)
    win = jnp.concatenate([xpad[:, t:t + T, :] for t in range(KSIZE)],
                          axis=-1).reshape(rows, KSIZE * D)          # (rows, 5D) bf16
    qk = jnp.dot(win, wqk_ref[0],
                 preferred_element_type=f32) + bqk_ref[0]            # (rows, 2D) f32

    # ---- per-head scores, ONE batched softmax, sum of per-head probability maps
    #      (V is shared across heads; the 1/n_head mean is folded into wvh)
    scores = []
    for h in range(n_head):
        qh = qk[:, h * d_v:(h + 1) * d_v].reshape(Bb, T, d_v).astype(bf16)
        kh = qk[:, D + h * d_v:D + (h + 1) * d_v].reshape(Bb, T, d_v).astype(bf16)
        scores.append(jnp.einsum("bqd,bkd->bqk", qh, kh,
                                 preferred_element_type=f32) * scale)
    s = jnp.stack(scores, axis=1)                                    # (Bb, H, T, T)
    s = s - jnp.max(s, axis=-1, keepdims=True)
    e = jnp.exp(s)
    p = e * pl.reciprocal(jnp.sum(e, axis=-1, keepdims=True))        # exact reciprocal
    attn_sum = jnp.sum(p, axis=1)                                    # (Bb, T, T)

    # ---- folded V + output projection: attn_out = attn_sum @ (x @ (wv @ wh / H))
    xv = jnp.dot(x_bf, wvh_ref[0], preferred_element_type=f32)       # (rows, D)
    attn_out = jnp.einsum("bqk,bkd->bqd",
                          attn_sum.astype(bf16),
                          xv.reshape(Bb, T, D).astype(bf16),
                          preferred_element_type=f32).reshape(rows, D)

    def gate_add_norm(y, skip, w4_ref, b4_ref, w5_ref, b5_ref, g_ref, b_ref):
        # GLU: sigmoid(y W4 + b4) * (y W5 + b5) ; add skip ; LayerNorm.
        # Two separate (D, D) matmuls — no intra-vreg lane slicing of a 2D-wide result.
        yb = y.astype(bf16)
        g4 = jnp.dot(yb, w4_ref[0], preferred_element_type=f32) + b4_ref[0]
        g5 = jnp.dot(yb, w5_ref[0], preferred_element_type=f32) + b5_ref[0]
        z = jax.nn.sigmoid(g4) * g5 + skip
        mu = jnp.mean(z, axis=-1, keepdims=True)
        var = jnp.mean((z - mu) ** 2, axis=-1, keepdims=True)
        return (z - mu) * jax.lax.rsqrt(var + 1e-5) * g_ref[0] + b_ref[0]

    # ---- GateAddNorm #1
    x1 = gate_add_norm(attn_out, x2d, w4a_ref, b4a_ref, w5a_ref, b5a_ref,
                       ln1g_ref, ln1b_ref)

    # ---- position-wise FFN: Linear -> ReLU -> Linear (no biases)
    h1 = jnp.maximum(jnp.dot(x1.astype(bf16), wf1_ref[0],
                             preferred_element_type=f32), 0.0)
    h2 = jnp.dot(h1.astype(bf16), wf2_ref[0], preferred_element_type=f32)

    # ---- GateAddNorm #2
    x2 = gate_add_norm(h2, x1, w4b_ref, b4b_ref, w5b_ref, b5b_ref,
                       ln2g_ref, ln2b_ref)

    x_scr[...] = x2                                   # carry to next layer

    @pl.when(l == pl.num_programs(1) - 1)
    def _():
        out_ref[...] = x2.astype(out_ref.dtype)       # single store at the last layer


# --------------------------- weight packing ---------------------------
def _pack_params(layer_params):
    """Stack per-layer weights on a leading layer axis (indexed by the layer grid axis),
    pre-fuse conv-Q/K into one im2col weight, fold wv @ (wh / n_head) into a single
    (D, D) weight, and cast matmul weights to bf16."""
    f32, bf16 = jnp.float32, jnp.bfloat16
    keys = ["wqk", "bqk", "wvh",
            "w4a", "b4a", "w5a", "b5a", "ln1g", "ln1b",
            "wf1", "wf2",
            "w4b", "b4b", "w5b", "b5b", "ln2g", "ln2b"]
    cols = {k: [] for k in keys}
    for p in layer_params:
        D, d_v = p["wv"].shape
        n_head = D // d_v
        cols["wqk"].append(jnp.concatenate(
            [jnp.concatenate([p["wq"][t], p["wk"][t]], axis=1) for t in range(KSIZE)],
            axis=0))                                              # (K*D, 2D)
        cols["bqk"].append(jnp.concatenate([p["bq"], p["bk"]], axis=1))   # (1, 2D)
        cols["wvh"].append(p["wv"] @ p["wh"] / n_head)            # (D, D): V, wh, head-mean folded
        cols["w4a"].append(p["w4a"]); cols["b4a"].append(p["b4a"])
        cols["w5a"].append(p["w5a"]); cols["b5a"].append(p["b5a"])
        cols["ln1g"].append(p["ln1g"]); cols["ln1b"].append(p["ln1b"])
        cols["wf1"].append(p["wf1"]); cols["wf2"].append(p["wf2"])
        cols["w4b"].append(p["w4b"]); cols["b4b"].append(p["b4b"])
        cols["w5b"].append(p["w5b"]); cols["b5b"].append(p["b5b"])
        cols["ln2g"].append(p["ln2g"]); cols["ln2b"].append(p["ln2b"])

    matmul_weights = {"wqk", "wvh", "w4a", "w5a", "wf1", "wf2", "w4b", "w5b"}
    packed = []
    for k in keys:
        arr = jnp.stack(cols[k])                      # leading layer axis
        packed.append(arr.astype(bf16 if k in matmul_weights else f32))
    return tuple(packed)


# ------------------------------ wrapper ------------------------------
def _pick_block_b(B, T):
    """Target ~256-512 rows per grid step, keep rows sublane (8) aligned."""
    divs = [d for d in range(1, B + 1) if B % d == 0]
    valid = [d for d in divs if (d * T) % 8 == 0] or [B]
    small = [d for d in valid if d * T <= 512]
    return max(small) if small else min(valid)


def conv_attention_forward(x, layer_params, *, block_b=None):
    """convAttention forward.  grid = (batch blocks, layers); one fused pallas_call."""
    B, T, D = x.shape
    n_layers = len(layer_params)
    n_head = D // layer_params[0]["wv"].shape[-1]
    weights = _pack_params(layer_params)

    if block_b is None:
        block_b = _pick_block_b(B, T)
        # Megacore split only on v7x (2 TensorCores) and only if each half still
        # feeds the MXU >= 256 rows; on v5e/v6e extra grid steps are pure overhead.
        try:
            is_v7 = "v7" in jax.devices()[0].device_kind.lower()
        except Exception:
            is_v7 = False
        if is_v7 and B // block_b < 2:
            for d in range(block_b - 1, 0, -1):
                if B % d == 0 and (d * T) % 8 == 0 and d * T >= 256:
                    block_b = d
                    break
    assert B % block_b == 0
    rows = block_b * T
    nb = B // block_b

    x2d = x.reshape(B * T, D)                         # free metadata reshape

    def w_spec(a):
        nd = a.ndim
        # one layer's slice per grid step; next layer's weights prefetched under compute
        return pl.BlockSpec((1,) + a.shape[1:],
                            lambda b, l, _nd=nd: (l,) + (0,) * (_nd - 1))

    in_specs = [pl.BlockSpec((rows, D), lambda b, l: (b, 0))] + [w_spec(w) for w in weights]
    out_spec = pl.BlockSpec((rows, D), lambda b, l: (b, 0))

    kernel = functools.partial(
        _conv_attention_layer_kernel,
        block_b=block_b, seq_len=T, d_model=D, n_head=n_head)

    y2d = pl.pallas_call(
        kernel,
        out_shape=jax.ShapeDtypeStruct((B * T, D), x.dtype),
        grid=(nb, n_layers),
        in_specs=in_specs,
        out_specs=out_spec,
        scratch_shapes=[pltpu.VMEM((rows, D), jnp.float32)],     # residual-stream carry
        compiler_params=pltpu.CompilerParams(
            dimension_semantics=("parallel", "arbitrary"),
            vmem_limit_bytes=32 * 1024 * 1024),
    )(x2d, *weights)
    return y2d.reshape(B, T, D)


# ------------------------- deterministic parameter init -------------------------
def _xavier(key, shape, fan_in, fan_out):
    limit = math.sqrt(6.0 / (fan_in + fan_out))
    return jax.random.uniform(key, shape, jnp.float32, -limit, limit)


def init_layer_params(key, d_model, n_head, d_ff):
    D, d_k = d_model, d_model // n_head
    ks = jax.random.split(key, 10)
    # Per-head Conv1d weights in PyTorch layout (out=d_k, in=D, K), stacked over heads.
    wq_pt = jnp.concatenate(
        [_xavier(kk, (d_k, D, KSIZE), D * KSIZE, d_k * KSIZE)
         for kk in jax.random.split(ks[0], n_head)], axis=0)          # (D, D, K)
    wk_pt = jnp.concatenate(
        [_xavier(kk, (d_k, D, KSIZE), D * KSIZE, d_k * KSIZE)
         for kk in jax.random.split(ks[1], n_head)], axis=0)          # (D, D, K)
    wv_pt = _xavier(ks[2], (d_k, D, 1), D, d_k)                       # v_layer (kernel=1, no bias)
    wh_pt = _xavier(ks[3], (D, d_k), d_k, D)                          # w_h: Linear(d_v, D, no bias)

    z = lambda: jnp.zeros((1, D), jnp.float32)
    return dict(
        wq=jnp.transpose(wq_pt, (2, 1, 0)), bq=z(),                   # (K, D_in, D_out); zero biases
        wk=jnp.transpose(wk_pt, (2, 1, 0)), bk=z(),
        wv=jnp.transpose(wv_pt[:, :, 0]),                             # (D, d_v)
        wh=jnp.transpose(wh_pt),                                      # (d_v, D)
        w4a=jnp.transpose(_xavier(ks[4], (D, D), D, D)), b4a=z(),     # GLU of GateAddNorm #1
        w5a=jnp.transpose(_xavier(ks[5], (D, D), D, D)), b5a=z(),
        ln1g=jnp.ones((1, D), jnp.float32), ln1b=z(),
        wf1=jnp.transpose(_xavier(ks[6], (d_ff, D), D, d_ff)),        # (D, d_ff)
        wf2=jnp.transpose(_xavier(ks[7], (D, d_ff), d_ff, D)),        # (d_ff, D)
        w4b=jnp.transpose(_xavier(ks[8], (D, D), D, D)), b4b=z(),     # GLU of GateAddNorm #2
        w5b=jnp.transpose(_xavier(ks[9], (D, D), D, D)), b5b=z(),
        ln2g=jnp.ones((1, D), jnp.float32), ln2b=z(),
    )


# ------------------------- pure-JAX reference (for validation) -------------------------
def _ref_layer(x, p):
    B, T, D = x.shape
    d_v = p["wv"].shape[-1]
    n_head = D // d_v
    xpad = jnp.pad(x, ((0, 0), (KSIZE - 1, 0), (0, 0)))
    q = jnp.zeros((B, T, D), jnp.float32) + p["bq"][0]
    k = jnp.zeros((B, T, D), jnp.float32) + p["bk"][0]
    for tau in range(KSIZE):
        q = q + jnp.einsum("bti,io->bto", xpad[:, tau:tau + T], p["wq"][tau])
        k = k + jnp.einsum("bti,io->bto", xpad[:, tau:tau + T], p["wk"][tau])
    v = jnp.einsum("bti,io->bto", x, p["wv"])
    scale = 1.0 / math.sqrt(d_v)
    heads = []
    for h in range(n_head):
        qh, kh = q[..., h * d_v:(h + 1) * d_v], k[..., h * d_v:(h + 1) * d_v]
        a = jax.nn.softmax(jnp.einsum("bqd,bkd->bqk", qh, kh) * scale, axis=-1)
        heads.append(jnp.einsum("bqk,bkd->bqd", a, v))
    attn_out = (sum(heads) / n_head) @ p["wh"]

    def gan(y, skip, w4, b4, w5, b5, g, b):
        zz = jax.nn.sigmoid(y @ w4 + b4[0]) * (y @ w5 + b5[0]) + skip
        mu = zz.mean(-1, keepdims=True)
        var = ((zz - mu) ** 2).mean(-1, keepdims=True)
        return (zz - mu) / jnp.sqrt(var + 1e-5) * g[0] + b[0]

    x1 = gan(attn_out, x, p["w4a"], p["b4a"], p["w5a"], p["b5a"], p["ln1g"], p["ln1b"])
    h = jnp.maximum(x1 @ p["wf1"], 0.0) @ p["wf2"]
    return gan(h, x1, p["w4b"], p["b4b"], p["w5b"], p["b5b"], p["ln2g"], p["ln2b"])


if __name__ == "__main__":
    # args: n_layers=2, n_heads=4, hidden_layer_size=32, d_ff=64, dropout_rate=0 (eval)
    B, T, D = 2, 16, 32
    n_heads, d_ff, n_layers = 4, 64, 2

    key = jax.random.PRNGKey(0)
    kx, kp = jax.random.split(key)
    x = jax.random.normal(kx, (B, T, D), jnp.float32)
    params = [init_layer_params(k, D, n_heads, d_ff)
              for k in jax.random.split(kp, n_layers)]

    y = jax.block_until_ready(conv_attention_forward(x, params))

    # sanity-check against a pure-JAX f32 reference; bf16 matmul operands widen the
    # tolerance slightly relative to a pure-f32 kernel.
    ref = x
    for p in params:
        ref = _ref_layer(ref, p)
    err = float(jnp.max(jnp.abs(y - ref)))
    assert err < 1.5e-1, f"mismatch vs reference: max abs err = {err}"

    print("KERNEL_OK")
</pallas_src>

<mosaic_0001>
module attributes {stable_mosaic.version = 11 : i64} {
  func.func @_conv_attention_layer_kernel(%arg0: i32, %arg1: i32, %arg2: memref<32x32xf32, #tpu.memory_space<vmem>>, %arg3: memref<1x160x64xbf16, #tpu.memory_space<vmem>>, %arg4: memref<1x1x64xf32, #tpu.memory_space<vmem>>, %arg5: memref<1x32x32xbf16, #tpu.memory_space<vmem>>, %arg6: memref<1x32x32xbf16, #tpu.memory_space<vmem>>, %arg7: memref<1x1x32xf32, #tpu.memory_space<vmem>>, %arg8: memref<1x32x32xbf16, #tpu.memory_space<vmem>>, %arg9: memref<1x1x32xf32, #tpu.memory_space<vmem>>, %arg10: memref<1x1x32xf32, #tpu.memory_space<vmem>>, %arg11: memref<1x1x32xf32, #tpu.memory_space<vmem>>, %arg12: memref<1x32x64xbf16, #tpu.memory_space<vmem>>, %arg13: memref<1x64x32xbf16, #tpu.memory_space<vmem>>, %arg14: memref<1x32x32xbf16, #tpu.memory_space<vmem>>, %arg15: memref<1x1x32xf32, #tpu.memory_space<vmem>>, %arg16: memref<1x32x32xbf16, #tpu.memory_space<vmem>>, %arg17: memref<1x1x32xf32, #tpu.memory_space<vmem>>, %arg18: memref<1x1x32xf32, #tpu.memory_space<vmem>>, %arg19: memref<1x1x32xf32, #tpu.memory_space<vmem>>, %arg20: memref<32x32xf32, #tpu.memory_space<vmem>>, %arg21: memref<32x32xf32, #tpu.memory_space<vmem>>) attributes {dimension_semantics = [#tpu.dimension_semantics<parallel>, #tpu.dimension_semantics<arbitrary>], iteration_bounds = array<i64: 1, 2>, scalar_prefetch = 0 : i64, scratch_operands = 1 : i64, tpu.core_type = #tpu.core_type<tc>, window_params = [{transform_indices = @transform_0, window_bounds = array<i64: 32, 32>}, {transform_indices = @transform_1, window_bounds = array<i64: 1, 160, 64>}, {transform_indices = @transform_2, window_bounds = array<i64: 1, 1, 64>}, {transform_indices = @transform_3, window_bounds = array<i64: 1, 32, 32>}, {transform_indices = @transform_4, window_bounds = array<i64: 1, 32, 32>}, {transform_indices = @transform_5, window_bounds = array<i64: 1, 1, 32>}, {transform_indices = @transform_6, window_bounds = array<i64: 1, 32, 32>}, {transform_indices = @transform_7, window_bounds = array<i64: 1, 1, 32>}, {transform_indices = @transform_8, window_bounds = array<i64: 1, 1, 32>}, {transform_indices = @transform_9, window_bounds = array<i64: 1, 1, 32>}, {transform_indices = @transform_10, window_bounds = array<i64: 1, 32, 64>}, {transform_indices = @transform_11, window_bounds = array<i64: 1, 64, 32>}, {transform_indices = @transform_12, window_bounds = array<i64: 1, 32, 32>}, {transform_indices = @transform_13, window_bounds = array<i64: 1, 1, 32>}, {transform_indices = @transform_14, window_bounds = array<i64: 1, 32, 32>}, {transform_indices = @transform_15, window_bounds = array<i64: 1, 1, 32>}, {transform_indices = @transform_16, window_bounds = array<i64: 1, 1, 32>}, {transform_indices = @transform_17, window_bounds = array<i64: 1, 1, 32>}, {transform_indices = @transform_18, window_bounds = array<i64: 32, 32>}]} {
    %c0_i32 = arith.constant 0 : i32
    %0 = arith.cmpi eq, %arg1, %c0_i32 : i32
    %1 = arith.extui %0 : i1 to i32
    %c0_i32_0 = arith.constant 0 : i32
    %2 = arith.cmpi ne, %1, %c0_i32_0 : i32
    scf.if %2 {
      %c0_89 = arith.constant 0 : index
      %c0_90 = arith.constant 0 : index
      %192 = vector.load %arg2[%c0_89, %c0_90] : memref<32x32xf32, #tpu.memory_space<vmem>>, vector<32x32xf32>
      %c0_91 = arith.constant 0 : index
      %c0_92 = arith.constant 0 : index
      %193 = vector.load %arg21[%c0_91, %c0_92] : memref<32x32xf32, #tpu.memory_space<vmem>>, vector<32x32xf32>
      tpu.vector_store %arg21[%c0_91, %c0_92], %192 {strides = array<i32>} : memref<32x32xf32, #tpu.memory_space<vmem>>, vector<32x32xf32>,
    } else {
    }
    %c0 = arith.constant 0 : index
    %c0_1 = arith.constant 0 : index
    %3 = vector.load %arg21[%c0, %c0_1] : memref<32x32xf32, #tpu.memory_space<vmem>>, vector<32x32xf32>
    %4 = arith.truncf %3 : vector<32x32xf32> to vector<32x32xbf16>
    %5 = vector.shape_cast %4 : vector<32x32xbf16> to vector<2x16x32xbf16>
    %cst = arith.constant 0.000000e+00 : bf16
    %6 = vector.broadcast %cst : bf16 to vector<2x4x32xbf16>
    %7 = tpu.concatenate %6, %5 in 1 : vector<2x4x32xbf16>, vector<2x16x32xbf16> -> vector<2x20x32xbf16>
    %8 = vector.extract_strided_slice %7 {offsets = [0, 0, 0], sizes = [2, 16, 32], strides = [1, 1, 1]} : vector<2x20x32xbf16> to vector<2x16x32xbf16>
    %9 = vector.extract_strided_slice %7 {offsets = [0, 1, 0], sizes = [2, 16, 32], strides = [1, 1, 1]} : vector<2x20x32xbf16> to vector<2x16x32xbf16>
    %10 = vector.extract_strided_slice %7 {offsets = [0, 2, 0], sizes = [2, 16, 32], strides = [1, 1, 1]} : vector<2x20x32xbf16> to vector<2x16x32xbf16>
    %11 = vector.extract_strided_slice %7 {offsets = [0, 3, 0], sizes = [2, 16, 32], strides = [1, 1, 1]} : vector<2x20x32xbf16> to vector<2x16x32xbf16>
    %12 = vector.extract_strided_slice %7 {offsets = [0, 4, 0], sizes = [2, 16, 32], strides = [1, 1, 1]} : vector<2x20x32xbf16> to vector<2x16x32xbf16>
    %13 = tpu.concatenate %8, %9, %10, %11, %12 in 2 : vector<2x16x32xbf16>, vector<2x16x32xbf16>, vector<2x16x32xbf16>, vector<2x16x32xbf16>, vector<2x16x32xbf16> -> vector<2x16x160xbf16>
    %14 = vector.shape_cast %13 : vector<2x16x160xbf16> to vector<32x160xbf16>
    %c0_2 = arith.constant 0 : index
    %c0_3 = arith.constant 0 : index
    %c0_4 = arith.constant 0 : index
    %15 = vector.load %arg3[%c0_2, %c0_3, %c0_4] : memref<1x160x64xbf16, #tpu.memory_space<vmem>>, vector<1x160x64xbf16>
    %16 = vector.shape_cast %15 : vector<1x160x64xbf16> to vector<160x64xbf16>
    %cst_5 = arith.constant dense<0.000000e+00> : vector<32x64xf32>
    %17 = tpu.matmul %14, %16, %cst_5 {dimension_numbers = #tpu.dot_dimension_numbers<[1], [0], [0], [1], [0, 0, 1, 1], [], []>} : vector<32x160xbf16>, vector<160x64xbf16>, vector<32x64xf32> -> vector<32x64xf32>
    %c0_6 = arith.constant 0 : index
    %c0_7 = arith.constant 0 : index
    %c0_8 = arith.constant 0 : index
    %18 = vector.load %arg4[%c0_6, %c0_7, %c0_8] : memref<1x1x64xf32, #tpu.memory_space<vmem>>, vector<1x1x64xf32>
    %19 = vector.shape_cast %18 : vector<1x1x64xf32> to vector<1x64xf32>
    %20 = vector.broadcast %19 : vector<1x64xf32> to vector<32x64xf32>
    %21 = arith.addf %17, %20 : vector<32x64xf32>
    %22 = vector.extract_strided_slice %21 {offsets = [0, 0], sizes = [32, 8], strides = [1, 1]} : vector<32x64xf32> to vector<32x8xf32>
    %23 = vector.shape_cast %22 : vector<32x8xf32> to vector<2x16x8xf32>
    %24 = arith.truncf %23 : vector<2x16x8xf32> to vector<2x16x8xbf16>
    %25 = vector.extract_strided_slice %21 {offsets = [0, 32], sizes = [32, 8], strides = [1, 1]} : vector<32x64xf32> to vector<32x8xf32>
    %26 = vector.shape_cast %25 : vector<32x8xf32> to vector<2x16x8xf32>
    %27 = arith.truncf %26 : vector<2x16x8xf32> to vector<2x16x8xbf16>
    "tpu.trace_start"() <{level = 10 : i32, message = "bqd,bkd->bqk"}> : () -> ()
    %cst_9 = arith.constant dense<0.000000e+00> : vector<2x16x16xf32>
    %28 = tpu.matmul %24, %27, %cst_9 {dimension_numbers = #tpu.dot_dimension_numbers<[2], [2], [1], [1], [0, 0, 0, 1, 1, 1], [0], [0]>} : vector<2x16x8xbf16>, vector<2x16x8xbf16>, vector<2x16x16xf32> -> vector<2x16x16xf32>
    "tpu.trace_stop"() : () -> ()
    %cst_10 = arith.constant 0.353553385 : f32
    %29 = vector.broadcast %cst_10 : f32 to vector<2x16x16xf32>
    %30 = arith.mulf %28, %29 : vector<2x16x16xf32>
    %31 = vector.extract_strided_slice %21 {offsets = [0, 8], sizes = [32, 8], strides = [1, 1]} : vector<32x64xf32> to vector<32x8xf32>
    %32 = vector.shape_cast %31 : vector<32x8xf32> to vector<2x16x8xf32>
    %33 = arith.truncf %32 : vector<2x16x8xf32> to vector<2x16x8xbf16>
    %34 = vector.extract_strided_slice %21 {offsets = [0, 40], sizes = [32, 8], strides = [1, 1]} : vector<32x64xf32> to vector<32x8xf32>
    %35 = vector.shape_cast %34 : vector<32x8xf32> to vector<2x16x8xf32>
    %36 = arith.truncf %35 : vector<2x16x8xf32> to vector<2x16x8xbf16>
    "tpu.trace_start"() <{level = 10 : i32, message = "bqd,bkd->bqk"}> : () -> ()
    %cst_11 = arith.constant dense<0.000000e+00> : vector<2x16x16xf32>
    %37 = tpu.matmul %33, %36, %cst_11 {dimension_numbers = #tpu.dot_dimension_numbers<[2], [2], [1], [1], [0, 0, 0, 1, 1, 1], [0], [0]>} : vector<2x16x8xbf16>, vector<2x16x8xbf16>, vector<2x16x16xf32> -> vector<2x16x16xf32>
    "tpu.trace_stop"() : () -> ()
    %cst_12 = arith.constant 0.353553385 : f32
    %38 = vector.broadcast %cst_12 : f32 to vector<2x16x16xf32>
    %39 = arith.mulf %37, %38 : vector<2x16x16xf32>
    %40 = vector.extract_strided_slice %21 {offsets = [0, 16], sizes = [32, 8], strides = [1, 1]} : vector<32x64xf32> to vector<32x8xf32>
    %41 = vector.shape_cast %40 : vector<32x8xf32> to vector<2x16x8xf32>
    %42 = arith.truncf %41 : vector<2x16x8xf32> to vector<2x16x8xbf16>
    %43 = vector.extract_strided_slice %21 {offsets = [0, 48], sizes = [32, 8], strides = [1, 1]} : vector<32x64xf32> to vector<32x8xf32>
    %44 = vector.shape_cast %43 : vector<32x8xf32> to vector<2x16x8xf32>
    %45 = arith.truncf %44 : vector<2x16x8xf32> to vector<2x16x8xbf16>
    "tpu.trace_start"() <{level = 10 : i32, message = "bqd,bkd->bqk"}> : () -> ()
    %cst_13 = arith.constant dense<0.000000e+00> : vector<2x16x16xf32>
    %46 = tpu.matmul %42, %45, %cst_13 {dimension_numbers = #tpu.dot_dimension_numbers<[2], [2], [1], [1], [0, 0, 0, 1, 1, 1], [0], [0]>} : vector<2x16x8xbf16>, vector<2x16x8xbf16>, vector<2x16x16xf32> -> vector<2x16x16xf32>
    "tpu.trace_stop"() : () -> ()
    %cst_14 = arith.constant 0.353553385 : f32
    %47 = vector.broadcast %cst_14 : f32 to vector<2x16x16xf32>
    %48 = arith.mulf %46, %47 : vector<2x16x16xf32>
    %49 = vector.extract_strided_slice %21 {offsets = [0, 24], sizes = [32, 8], strides = [1, 1]} : vector<32x64xf32> to vector<32x8xf32>
    %50 = vector.shape_cast %49 : vector<32x8xf32> to vector<2x16x8xf32>
    %51 = arith.truncf %50 : vector<2x16x8xf32> to vector<2x16x8xbf16>
    %52 = vector.extract_strided_slice %21 {offsets = [0, 56], sizes = [32, 8], strides = [1, 1]} : vector<32x64xf32> to vector<32x8xf32>
    %53 = vector.shape_cast %52 : vector<32x8xf32> to vector<2x16x8xf32>
    %54 = arith.truncf %53 : vector<2x16x8xf32> to vector<2x16x8xbf16>
    "tpu.trace_start"() <{level = 10 : i32, message = "bqd,bkd->bqk"}> : () -> ()
    %cst_15 = arith.constant dense<0.000000e+00> : vector<2x16x16xf32>
    %55 = tpu.matmul %51, %54, %cst_15 {dimension_numbers = #tpu.dot_dimension_numbers<[2], [2], [1], [1], [0, 0, 0, 1, 1, 1], [0], [0]>} : vector<2x16x8xbf16>, vector<2x16x8xbf16>, vector<2x16x16xf32> -> vector<2x16x16xf32>
    "tpu.trace_stop"() : () -> ()
    %cst_16 = arith.constant 0.353553385 : f32
    %56 = vector.broadcast %cst_16 : f32 to vector<2x16x16xf32>
    %57 = arith.mulf %55, %56 : vector<2x16x16xf32>
    %58 = vector.shape_cast %30 : vector<2x16x16xf32> to vector<2x1x16x16xf32>
    %59 = vector.shape_cast %39 : vector<2x16x16xf32> to vector<2x1x16x16xf32>
    %60 = vector.shape_cast %48 : vector<2x16x16xf32> to vector<2x1x16x16xf32>
    %61 = vector.shape_cast %57 : vector<2x16x16xf32> to vector<2x1x16x16xf32>
    %62 = tpu.concatenate %58, %59, %60, %61 in 1 : vector<2x1x16x16xf32>, vector<2x1x16x16xf32>, vector<2x1x16x16xf32>, vector<2x1x16x16xf32> -> vector<2x4x16x16xf32>
    %cst_17 = arith.constant dense<0xFF800000> : vector<2x4x16xf32>
    %63 = vector.multi_reduction <maximumf>, %62, %cst_17 [3] : vector<2x4x16x16xf32> to vector<2x4x16xf32>
    %64 = vector.shape_cast %63 : vector<2x4x16xf32> to vector<2x4x16x1xf32>
    %65 = vector.broadcast %64 : vector<2x4x16x1xf32> to vector<2x4x16x16xf32>
    %66 = arith.subf %62, %65 : vector<2x4x16x16xf32>
    %67 = math.exp %66 : vector<2x4x16x16xf32>
    %cst_18 = arith.constant dense<0.000000e+00> : vector<2x4x16xf32>
    %68 = vector.multi_reduction <add>, %67, %cst_18 [3] : vector<2x4x16x16xf32> to vector<2x4x16xf32>
    %69 = vector.shape_cast %68 : vector<2x4x16xf32> to vector<2x4x16x1xf32>
    %70 = tpu.reciprocal %69 : vector<2x4x16x1xf32> -> vector<2x4x16x1xf32>
    %71 = vector.broadcast %70 : vector<2x4x16x1xf32> to vector<2x4x16x16xf32>
    %72 = arith.mulf %67, %71 : vector<2x4x16x16xf32>
    %cst_19 = arith.constant dense<0.000000e+00> : vector<2x16x16xf32>
    %73 = vector.multi_reduction <add>, %72, %cst_19 [1] : vector<2x4x16x16xf32> to vector<2x16x16xf32>
    %c0_20 = arith.constant 0 : index
    %c0_21 = arith.constant 0 : index
    %c0_22 = arith.constant 0 : index
    %74 = vector.load %arg5[%c0_20, %c0_21, %c0_22] : memref<1x32x32xbf16, #tpu.memory_space<vmem>>, vector<1x32x32xbf16>
    %75 = vector.shape_cast %74 : vector<1x32x32xbf16> to vector<32x32xbf16>
    %cst_23 = arith.constant dense<0.000000e+00> : vector<32x32xf32>
    %76 = tpu.matmul %4, %75, %cst_23 {dimension_numbers = #tpu.dot_dimension_numbers<[1], [0], [0], [1], [0, 0, 1, 1], [], []>} : vector<32x32xbf16>, vector<32x32xbf16>, vector<32x32xf32> -> vector<32x32xf32>
    %77 = arith.truncf %73 : vector<2x16x16xf32> to vector<2x16x16xbf16>
    %78 = vector.shape_cast %76 : vector<32x32xf32> to vector<2x16x32xf32>
    %79 = arith.truncf %78 : vector<2x16x32xf32> to vector<2x16x32xbf16>
    "tpu.trace_start"() <{level = 10 : i32, message = "bqk,bkd->bqd"}> : () -> ()
    %cst_24 = arith.constant dense<0.000000e+00> : vector<2x16x32xf32>
    %80 = tpu.matmul %77, %79, %cst_24 {dimension_numbers = #tpu.dot_dimension_numbers<[2], [1], [1], [2], [0, 0, 0, 1, 1, 2], [0], [0]>} : vector<2x16x16xbf16>, vector<2x16x32xbf16>, vector<2x16x32xf32> -> vector<2x16x32xf32>
    "tpu.trace_stop"() : () -> ()
    %81 = vector.shape_cast %80 : vector<2x16x32xf32> to vector<32x32xf32>
    %82 = arith.truncf %81 : vector<32x32xf32> to vector<32x32xbf16>
    %c0_25 = arith.constant 0 : index
    %c0_26 = arith.constant 0 : index
    %c0_27 = arith.constant 0 : index
    %83 = vector.load %arg6[%c0_25, %c0_26, %c0_27] : memref<1x32x32xbf16, #tpu.memory_space<vmem>>, vector<1x32x32xbf16>
    %84 = vector.shape_cast %83 : vector<1x32x32xbf16> to vector<32x32xbf16>
    %cst_28 = arith.constant dense<0.000000e+00> : vector<32x32xf32>
    %85 = tpu.matmul %82, %84, %cst_28 {dimension_numbers = #tpu.dot_dimension_numbers<[1], [0], [0], [1], [0, 0, 1, 1], [], []>} : vector<32x32xbf16>, vector<32x32xbf16>, vector<32x32xf32> -> vector<32x32xf32>
    %c0_29 = arith.constant 0 : index
    %c0_30 = arith.constant 0 : index
    %c0_31 = arith.constant 0 : index
    %86 = vector.load %arg7[%c0_29, %c0_30, %c0_31] : memref<1x1x32xf32, #tpu.memory_space<vmem>>, vector<1x1x32xf32>
    %87 = vector.shape_cast %86 : vector<1x1x32xf32> to vector<1x32xf32>
    %88 = vector.broadcast %87 : vector<1x32xf32> to vector<32x32xf32>
    %89 = arith.addf %85, %88 : vector<32x32xf32>
    %c0_32 = arith.constant 0 : index
    %c0_33 = arith.constant 0 : index
    %c0_34 = arith.constant 0 : index
    %90 = vector.load %arg8[%c0_32, %c0_33, %c0_34] : memref<1x32x32xbf16, #tpu.memory_space<vmem>>, vector<1x32x32xbf16>
    %91 = vector.shape_cast %90 : vector<1x32x32xbf16> to vector<32x32xbf16>
    %cst_35 = arith.constant dense<0.000000e+00> : vector<32x32xf32>
    %92 = tpu.matmul %82, %91, %cst_35 {dimension_numbers = #tpu.dot_dimension_numbers<[1], [0], [0], [1], [0, 0, 1, 1], [], []>} : vector<32x32xbf16>, vector<32x32xbf16>, vector<32x32xf32> -> vector<32x32xf32>
    %c0_36 = arith.constant 0 : index
    %c0_37 = arith.constant 0 : index
    %c0_38 = arith.constant 0 : index
    %93 = vector.load %arg9[%c0_36, %c0_37, %c0_38] : memref<1x1x32xf32, #tpu.memory_space<vmem>>, vector<1x1x32xf32>
    %94 = vector.shape_cast %93 : vector<1x1x32xf32> to vector<1x32xf32>
    %95 = vector.broadcast %94 : vector<1x32xf32> to vector<32x32xf32>
    %96 = arith.addf %92, %95 : vector<32x32xf32>
    %97 = arith.negf %89 : vector<32x32xf32>
    %98 = math.exp %97 : vector<32x32xf32>
    %cst_39 = arith.constant 1.000000e+00 : f32
    %99 = vector.broadcast %cst_39 : f32 to vector<32x32xf32>
    %100 = arith.addf %99, %98 : vector<32x32xf32>
    %101 = arith.divf %99, %100 : vector<32x32xf32>
    %102 = arith.mulf %101, %96 : vector<32x32xf32>
    %103 = arith.addf %102, %3 : vector<32x32xf32>
    %cst_40 = arith.constant dense<0.000000e+00> : vector<32xf32>
    %104 = vector.multi_reduction <add>, %103, %cst_40 [1] : vector<32x32xf32> to vector<32xf32>
    %105 = vector.shape_cast %104 : vector<32xf32> to vector<32x1xf32>
    %cst_41 = arith.constant 3.200000e+01 : f32
    %106 = vector.broadcast %cst_41 : f32 to vector<32x1xf32>
    %107 = arith.divf %105, %106 : vector<32x1xf32>
    %108 = vector.broadcast %107 : vector<32x1xf32> to vector<32x32xf32>
    %109 = arith.subf %103, %108 : vector<32x32xf32>
    %110 = arith.mulf %109, %109 : vector<32x32xf32>
    %cst_42 = arith.constant dense<0.000000e+00> : vector<32xf32>
    %111 = vector.multi_reduction <add>, %110, %cst_42 [1] : vector<32x32xf32> to vector<32xf32>
    %112 = vector.shape_cast %111 : vector<32xf32> to vector<32x1xf32>
    %cst_43 = arith.constant 3.200000e+01 : f32
    %113 = vector.broadcast %cst_43 : f32 to vector<32x1xf32>
    %114 = arith.divf %112, %113 : vector<32x1xf32>
    %115 = vector.broadcast %107 : vector<32x1xf32> to vector<32x32xf32>
    %116 = arith.subf %103, %115 : vector<32x32xf32>
    %cst_44 = arith.constant 9.99999974E-6 : f32
    %117 = vector.broadcast %cst_44 : f32 to vector<32x1xf32>
    %118 = arith.addf %114, %117 : vector<32x1xf32>
    %119 = math.rsqrt %118 : vector<32x1xf32>
    %120 = vector.broadcast %119 : vector<32x1xf32> to vector<32x32xf32>
    %121 = arith.mulf %116, %120 : vector<32x32xf32>
    %c0_45 = arith.constant 0 : index
    %c0_46 = arith.constant 0 : index
    %c0_47 = arith.constant 0 : index
    %122 = vector.load %arg10[%c0_45, %c0_46, %c0_47] : memref<1x1x32xf32, #tpu.memory_space<vmem>>, vector<1x1x32xf32>
    %123 = vector.shape_cast %122 : vector<1x1x32xf32> to vector<1x32xf32>
    %124 = vector.broadcast %123 : vector<1x32xf32> to vector<32x32xf32>
    %125 = arith.mulf %121, %124 : vector<32x32xf32>
    %c0_48 = arith.constant 0 : index
    %c0_49 = arith.constant 0 : index
    %c0_50 = arith.constant 0 : index
    %126 = vector.load %arg11[%c0_48, %c0_49, %c0_50] : memref<1x1x32xf32, #tpu.memory_space<vmem>>, vector<1x1x32xf32>
    %127 = vector.shape_cast %126 : vector<1x1x32xf32> to vector<1x32xf32>
    %128 = vector.broadcast %127 : vector<1x32xf32> to vector<32x32xf32>
    %129 = arith.addf %125, %128 : vector<32x32xf32>
    %130 = arith.truncf %129 : vector<32x32xf32> to vector<32x32xbf16>
    %c0_51 = arith.constant 0 : index
    %c0_52 = arith.constant 0 : index
    %c0_53 = arith.constant 0 : index
    %131 = vector.load %arg12[%c0_51, %c0_52, %c0_53] : memref<1x32x64xbf16, #tpu.memory_space<vmem>>, vector<1x32x64xbf16>
    %132 = vector.shape_cast %131 : vector<1x32x64xbf16> to vector<32x64xbf16>
    %cst_54 = arith.constant dense<0.000000e+00> : vector<32x64xf32>
    %133 = tpu.matmul %130, %132, %cst_54 {dimension_numbers = #tpu.dot_dimension_numbers<[1], [0], [0], [1], [0, 0, 1, 1], [], []>} : vector<32x32xbf16>, vector<32x64xbf16>, vector<32x64xf32> -> vector<32x64xf32>
    %cst_55 = arith.constant 0.000000e+00 : f32
    %134 = vector.broadcast %cst_55 : f32 to vector<32x64xf32>
    %135 = arith.maximumf %133, %134 : vector<32x64xf32>
    %136 = arith.truncf %135 : vector<32x64xf32> to vector<32x64xbf16>
    %c0_56 = arith.constant 0 : index
    %c0_57 = arith.constant 0 : index
    %c0_58 = arith.constant 0 : index
    %137 = vector.load %arg13[%c0_56, %c0_57, %c0_58] : memref<1x64x32xbf16, #tpu.memory_space<vmem>>, vector<1x64x32xbf16>
    %138 = vector.shape_cast %137 : vector<1x64x32xbf16> to vector<64x32xbf16>
    %cst_59 = arith.constant dense<0.000000e+00> : vector<32x32xf32>
    %139 = tpu.matmul %136, %138, %cst_59 {dimension_numbers = #tpu.dot_dimension_numbers<[1], [0], [0], [1], [0, 0, 1, 1], [], []>} : vector<32x64xbf16>, vector<64x32xbf16>, vector<32x32xf32> -> vector<32x32xf32>
    %140 = arith.truncf %139 : vector<32x32xf32> to vector<32x32xbf16>
    %c0_60 = arith.constant 0 : index
    %c0_61 = arith.constant 0 : index
    %c0_62 = arith.constant 0 : index
    %141 = vector.load %arg14[%c0_60, %c0_61, %c0_62] : memref<1x32x32xbf16, #tpu.memory_space<vmem>>, vector<1x32x32xbf16>
    %142 = vector.shape_cast %141 : vector<1x32x32xbf16> to vector<32x32xbf16>
    %cst_63 = arith.constant dense<0.000000e+00> : vector<32x32xf32>
    %143 = tpu.matmul %140, %142, %cst_63 {dimension_numbers = #tpu.dot_dimension_numbers<[1], [0], [0], [1], [0, 0, 1, 1], [], []>} : vector<32x32xbf16>, vector<32x32xbf16>, vector<32x32xf32> -> vector<32x32xf32>
    %c0_64 = arith.constant 0 : index
    %c0_65 = arith.constant 0 : index
    %c0_66 = arith.constant 0 : index
    %144 = vector.load %arg15[%c0_64, %c0_65, %c0_66] : memref<1x1x32xf32, #tpu.memory_space<vmem>>, vector<1x1x32xf32>
    %145 = vector.shape_cast %144 : vector<1x1x32xf32> to vector<1x32xf32>
    %146 = vector.broadcast %145 : vector<1x32xf32> to vector<32x32xf32>
    %147 = arith.addf %143, %146 : vector<32x32xf32>
    %c0_67 = arith.constant 0 : index
    %c0_68 = arith.constant 0 : index
    %c0_69 = arith.constant 0 : index
    %148 = vector.load %arg16[%c0_67, %c0_68, %c0_69] : memref<1x32x32xbf16, #tpu.memory_space<vmem>>, vector<1x32x32xbf16>
    %149 = vector.shape_cast %148 : vector<1x32x32xbf16> to vector<32x32xbf16>
    %cst_70 = arith.constant dense<0.000000e+00> : vector<32x32xf32>
    %150 = tpu.matmul %140, %149, %cst_70 {dimension_numbers = #tpu.dot_dimension_numbers<[1], [0], [0], [1], [0, 0, 1, 1], [], []>} : vector<32x32xbf16>, vector<32x32xbf16>, vector<32x32xf32> -> vector<32x32xf32>
    %c0_71 = arith.constant 0 : index
    %c0_72 = arith.constant 0 : index
    %c0_73 = arith.constant 0 : index
    %151 = vector.load %arg17[%c0_71, %c0_72, %c0_73] : memref<1x1x32xf32, #tpu.memory_space<vmem>>, vector<1x1x32xf32>
    %152 = vector.shape_cast %151 : vector<1x1x32xf32> to vector<1x32xf32>
    %153 = vector.broadcast %152 : vector<1x32xf32> to vector<32x32xf32>
    %154 = arith.addf %150, %153 : vector<32x32xf32>
    %155 = arith.negf %147 : vector<32x32xf32>
    %156 = math.exp %155 : vector<32x32xf32>
    %cst_74 = arith.constant 1.000000e+00 : f32
    %157 = vector.broadcast %cst_74 : f32 to vector<32x32xf32>
    %158 = arith.addf %157, %156 : vector<32x32xf32>
    %159 = arith.divf %157, %158 : vector<32x32xf32>
    %160 = arith.mulf %159, %154 : vector<32x32xf32>
    %161 = arith.addf %160, %129 : vector<32x32xf32>
    %cst_75 = arith.constant dense<0.000000e+00> : vector<32xf32>
    %162 = vector.multi_reduction <add>, %161, %cst_75 [1] : vector<32x32xf32> to vector<32xf32>
    %163 = vector.shape_cast %162 : vector<32xf32> to vector<32x1xf32>
    %cst_76 = arith.constant 3.200000e+01 : f32
    %164 = vector.broadcast %cst_76 : f32 to vector<32x1xf32>
    %165 = arith.divf %163, %164 : vector<32x1xf32>
    %166 = vector.broadcast %165 : vector<32x1xf32> to vector<32x32xf32>
    %167 = arith.subf %161, %166 : vector<32x32xf32>
    %168 = arith.mulf %167, %167 : vector<32x32xf32>
    %cst_77 = arith.constant dense<0.000000e+00> : vector<32xf32>
    %169 = vector.multi_reduction <add>, %168, %cst_77 [1] : vector<32x32xf32> to vector<32xf32>
    %170 = vector.shape_cast %169 : vector<32xf32> to vector<32x1xf32>
    %cst_78 = arith.constant 3.200000e+01 : f32
    %171 = vector.broadcast %cst_78 : f32 to vector<32x1xf32>
    %172 = arith.divf %170, %171 : vector<32x1xf32>
    %173 = vector.broadcast %165 : vector<32x1xf32> to vector<32x32xf32>
    %174 = arith.subf %161, %173 : vector<32x32xf32>
    %cst_79 = arith.constant 9.99999974E-6 : f32
    %175 = vector.broadcast %cst_79 : f32 to vector<32x1xf32>
    %176 = arith.addf %172, %175 : vector<32x1xf32>
    %177 = math.rsqrt %176 : vector<32x1xf32>
    %178 = vector.broadcast %177 : vector<32x1xf32> to vector<32x32xf32>
    %179 = arith.mulf %174, %178 : vector<32x32xf32>
    %c0_80 = arith.constant 0 : index
    %c0_81 = arith.constant 0 : index
    %c0_82 = arith.constant 0 : index
    %180 = vector.load %arg18[%c0_80, %c0_81, %c0_82] : memref<1x1x32xf32, #tpu.memory_space<vmem>>, vector<1x1x32xf32>
    %181 = vector.shape_cast %180 : vector<1x1x32xf32> to vector<1x32xf32>
    %182 = vector.broadcast %181 : vector<1x32xf32> to vector<32x32xf32>
    %183 = arith.mulf %179, %182 : vector<32x32xf32>
    %c0_83 = arith.constant 0 : index
    %c0_84 = arith.constant 0 : index
    %c0_85 = arith.constant 0 : index
    %184 = vector.load %arg19[%c0_83, %c0_84, %c0_85] : memref<1x1x32xf32, #tpu.memory_space<vmem>>, vector<1x1x32xf32>
    %185 = vector.shape_cast %184 : vector<1x1x32xf32> to vector<1x32xf32>
    %186 = vector.broadcast %185 : vector<1x32xf32> to vector<32x32xf32>
    %187 = arith.addf %183, %186 : vector<32x32xf32>
    %c0_86 = arith.constant 0 : index
    %c0_87 = arith.constant 0 : index
    %188 = vector.load %arg21[%c0_86, %c0_87] : memref<32x32xf32, #tpu.memory_space<vmem>>, vector<32x32xf32>
    tpu.vector_store %arg21[%c0_86, %c0_87], %187 {strides = array<i32>} : memref<32x32xf32, #tpu.memory_space<vmem>>, vector<32x32xf32>,
    %c1_i32 = arith.constant 1 : i32
    %189 = arith.cmpi eq, %arg1, %c1_i32 : i32
    %190 = arith.extui %189 : i1 to i32
    %c0_i32_88 = arith.constant 0 : i32
    %191 = arith.cmpi ne, %190, %c0_i32_88 : i32
    scf.if %191 {
      %c0_89 = arith.constant 0 : index
      %c0_90 = arith.constant 0 : index
      %192 = vector.load %arg20[%c0_89, %c0_90] : memref<32x32xf32, #tpu.memory_space<vmem>>, vector<32x32xf32>
      tpu.vector_store %arg20[%c0_89, %c0_90], %187 {strides = array<i32>} : memref<32x32xf32, #tpu.memory_space<vmem>>, vector<32x32xf32>,
    } else {
    }
    return
  }
  func.func @transform_0(%arg0: i32, %arg1: i32) -> (i32, i32) {
    %c0_i32 = arith.constant 0 : i32
    %c0_i32_0 = arith.constant 0 : i32
    return %arg0, %c0_i32 : i32, i32
  }
  func.func @transform_1(%arg0: i32, %arg1: i32) -> (i32, i32, i32) {
    %c0_i32 = arith.constant 0 : i32
    %c0_i32_0 = arith.constant 0 : i32
    %c0_i32_1 = arith.constant 0 : i32
    return %arg1, %c0_i32, %c0_i32_0 : i32, i32, i32
  }
  func.func @transform_2(%arg0: i32, %arg1: i32) -> (i32, i32, i32) {
    %c0_i32 = arith.constant 0 : i32
    %c0_i32_0 = arith.constant 0 : i32
    %c0_i32_1 = arith.constant 0 : i32
    return %arg1, %c0_i32, %c0_i32_0 : i32, i32, i32
  }
  func.func @transform_3(%arg0: i32, %arg1: i32) -> (i32, i32, i32) {
    %c0_i32 = arith.constant 0 : i32
    %c0_i32_0 = arith.constant 0 : i32
    %c0_i32_1 = arith.constant 0 : i32
    return %arg1, %c0_i32, %c0_i32_0 : i32, i32, i32
  }
  func.func @transform_4(%arg0: i32, %arg1: i32) -> (i32, i32, i32) {
    %c0_i32 = arith.constant 0 : i32
    %c0_i32_0 = arith.constant 0 : i32
    %c0_i32_1 = arith.constant 0 : i32
    return %arg1, %c0_i32, %c0_i32_0 : i32, i32, i32
  }
  func.func @transform_5(%arg0: i32, %arg1: i32) -> (i32, i32, i32) {
    %c0_i32 = arith.constant 0 : i32
    %c0_i32_0 = arith.constant 0 : i32
    %c0_i32_1 = arith.constant 0 : i32
    return %arg1, %c0_i32, %c0_i32_0 : i32, i32, i32
  }
  func.func @transform_6(%arg0: i32, %arg1: i32) -> (i32, i32, i32) {
    %c0_i32 = arith.constant 0 : i32
    %c0_i32_0 = arith.constant 0 : i32
    %c0_i32_1 = arith.constant 0 : i32
    return %arg1, %c0_i32, %c0_i32_0 : i32, i32, i32
  }
  func.func @transform_7(%arg0: i32, %arg1: i32) -> (i32, i32, i32) {
    %c0_i32 = arith.constant 0 : i32
    %c0_i32_0 = arith.constant 0 : i32
    %c0_i32_1 = arith.constant 0 : i32
    return %arg1, %c0_i32, %c0_i32_0 : i32, i32, i32
  }
  func.func @transform_8(%arg0: i32, %arg1: i32) -> (i32, i32, i32) {
    %c0_i32 = arith.constant 0 : i32
    %c0_i32_0 = arith.constant 0 : i32
    %c0_i32_1 = arith.constant 0 : i32
    return %arg1, %c0_i32, %c0_i32_0 : i32, i32, i32
  }
  func.func @transform_9(%arg0: i32, %arg1: i32) -> (i32, i32, i32) {
    %c0_i32 = arith.constant 0 : i32
    %c0_i32_0 = arith.constant 0 : i32
    %c0_i32_1 = arith.constant 0 : i32
    return %arg1, %c0_i32, %c0_i32_0 : i32, i32, i32
  }
  func.func @transform_10(%arg0: i32, %arg1: i32) -> (i32, i32, i32) {
    %c0_i32 = arith.constant 0 : i32
    %c0_i32_0 = arith.constant 0 : i32
    %c0_i32_1 = arith.constant 0 : i32
    return %arg1, %c0_i32, %c0_i32_0 : i32, i32, i32
  }
  func.func @transform_11(%arg0: i32, %arg1: i32) -> (i32, i32, i32) {
    %c0_i32 = arith.constant 0 : i32
    %c0_i32_0 = arith.constant 0 : i32
    %c0_i32_1 = arith.constant 0 : i32
    return %arg1, %c0_i32, %c0_i32_0 : i32, i32, i32
  }
  func.func @transform_12(%arg0: i32, %arg1: i32) -> (i32, i32, i32) {
    %c0_i32 = arith.constant 0 : i32
    %c0_i32_0 = arith.constant 0 : i32
    %c0_i32_1 = arith.constant 0 : i32
    return %arg1, %c0_i32, %c0_i32_0 : i32, i32, i32
  }
  func.func @transform_13(%arg0: i32, %arg1: i32) -> (i32, i32, i32) {
    %c0_i32 = arith.constant 0 : i32
    %c0_i32_0 = arith.constant 0 : i32
    %c0_i32_1 = arith.constant 0 : i32
    return %arg1, %c0_i32, %c0_i32_0 : i32, i32, i32
  }
  func.func @transform_14(%arg0: i32, %arg1: i32) -> (i32, i32, i32) {
    %c0_i32 = arith.constant 0 : i32
    %c0_i32_0 = arith.constant 0 : i32
    %c0_i32_1 = arith.constant 0 : i32
    return %arg1, %c0_i32, %c0_i32_0 : i32, i32, i32
  }
  func.func @transform_15(%arg0: i32, %arg1: i32) -> (i32, i32, i32) {
    %c0_i32 = arith.constant 0 : i32
    %c0_i32_0 = arith.constant 0 : i32
    %c0_i32_1 = arith.constant 0 : i32
    return %arg1, %c0_i32, %c0_i32_0 : i32, i32, i32
  }
  func.func @transform_16(%arg0: i32, %arg1: i32) -> (i32, i32, i32) {
    %c0_i32 = arith.constant 0 : i32
    %c0_i32_0 = arith.constant 0 : i32
    %c0_i32_1 = arith.constant 0 : i32
    return %arg1, %c0_i32, %c0_i32_0 : i32, i32, i32
  }
  func.func @transform_17(%arg0: i32, %arg1: i32) -> (i32, i32, i32) {
    %c0_i32 = arith.constant 0 : i32
    %c0_i32_0 = arith.constant 0 : i32
    %c0_i32_1 = arith.constant 0 : i32
    return %arg1, %c0_i32, %c0_i32_0 : i32, i32, i32
  }
  func.func @transform_18(%arg0: i32, %arg1: i32) -> (i32, i32) {
    %c0_i32 = arith.constant 0 : i32
    %c0_i32_0 = arith.constant 0 : i32
    return %arg0, %c0_i32 : i32, i32
  }
}

</mosaic_0001>

<bundles_post_ra>
// kernel: tpu_custom_call.1
= control target key start
LH: loop header
LB: loop body
LE: loop exit
PB: predicated region body
PF: predicated region fallthrough
CT: control target
= control target key end

     0   :  { %s4042_s0 = inlined_call_operand.vmem [shape: f32[32,32], index: 0, kind: input, shape index: {}]   ;;  %s4043_s1 = inlined_call_operand.vmem [shape: bf16[2,160,64], index: 1, kind: input, shape index: {}]   ;;  %s4044_s2 = inlined_call_operand.vmem [shape: f32[2,1,64], index: 2, kind: input, shape index: {}]   ;;  %s4045_s3 = inlined_call_operand.vmem [shape: bf16[2,32,32], index: 3, kind: input, shape index: {}]   ;;  %s4046_s4 = inlined_call_operand.vmem [shape: bf16[2,32,32], index: 4, kind: input, shape index: {}]   ;;  %s4047_s5 = inlined_call_operand.vmem [shape: f32[2,1,32], index: 5, kind: input, shape index: {}]   ;;  %s4048_s6 = inlined_call_operand.vmem [shape: bf16[2,32,32], index: 6, kind: input, shape index: {}]   ;;  %s4049_s7 = inlined_call_operand.vmem [shape: f32[2,1,32], index: 7, kind: input, shape index: {}]   ;;  %s4050_s8 = inlined_call_operand.vmem [shape: f32[2,1,32], index: 8, kind: input, shape index: {}]   ;;  %s4051_s9 = inlined_call_operand.vmem [shape: f32[2,1,32], index: 9, kind: input, shape index: {}]   ;;  %s4052_s10 = inlined_call_operand.vmem [shape: bf16[2,32,64], index: 10, kind: input, shape index: {}]   ;;  %s4053_s11 = inlined_call_operand.vmem [shape: bf16[2,64,32], index: 11, kind: input, shape index: {}]   ;;  %s4054_s12 = inlined_call_operand.vmem [shape: bf16[2,32,32], index: 12, kind: input, shape index: {}]   ;;  %s4055_s13 = inlined_call_operand.vmem [shape: f32[2,1,32], index: 13, kind: input, shape index: {}]   ;;  %s4056_s14 = inlined_call_operand.vmem [shape: bf16[2,32,32], index: 14, kind: input, shape index: {}]   ;;  %s4057_s15 = inlined_call_operand.vmem [shape: f32[2,1,32], index: 15, kind: input, shape index: {}]   ;;  %s4058_s16 = inlined_call_operand.vmem [shape: f32[2,1,32], index: 16, kind: input, shape index: {}]   ;;  %s4059_s17 = inlined_call_operand.vmem [shape: f32[2,1,32], index: 17, kind: input, shape index: {}]   ;;  %s4060_s18 = inlined_call_operand.hbm [shape: f32[32,32], index: 18, kind: output, shape index: {}]  }
   0x1   :  { %4068 = sst [smem:[#allocation12_spill]] %s4042_s0 }
   0x2   :  { %4069 = sst [smem:[#allocation13_spill]] %s4043_s1 }
   0x3   :  { %4070 = sst [smem:[#allocation14_spill]] %s4044_s2 }
   0x4   :  { %4071 = sst [smem:[#allocation15_spill]] %s4045_s3 }
   0x5   :  { %4072 = sst [smem:[#allocation16_spill]] %s4046_s4 }
   0x6   :  { %4073 = sst [smem:[#allocation17_spill]] %s4047_s5 }
   0x7   :  { %4074 = sst [smem:[#allocation18_spill]] %s4048_s6 }
   0x8   :  { %4075 = sst [smem:[#allocation19_spill]] %s4052_s10 }
   0x9   :  { %4076 = sst [smem:[#allocation20_spill]] %s4053_s11 }
   0xa   :  { %4077 = sst [smem:[#allocation21_spill]] %s4054_s12 }
   0xb   :  { %4078 = sst [smem:[#allocation22_spill]] %s4059_s17 }
   0xc   :  { %4079 = sst [smem:[#allocation23_spill]] %s4060_s18 }
   0xd   :  { %23 = vsyncpa [#allocation4], 0  ;;  %s3479_s27 = smov 0   ;;  %s3481_s28 = smov 0  }
   0xe   :  { %s3483_s29 = smov 0  }
   0xf LB: > { %4080 = sst [smem:[#allocation6_spill]] %s3359_s27  ;;  %s38_s0 = sadd.s32 1, %s3363_s28  ;;  %s3367_s29 = sphi %s3483_s29, %s29_s29   ;;  %s3363_s28 = sphi %s3481_s28, %s4115_s28   ;;  %s3359_s27 = sphi %s3479_s27, %s4114_s27  }
  0x10   : > { %4081 = sst [smem:[#allocation7_spill]] %s3363_s28  ;;  %p39_p0 = scmp.ge.s32.totalorder %s38_s0, 2 }
  0x11   : > { %4082 = sst [smem:[#allocation8_spill]] %s3367_s29  ;;  %p2859_p1 = scmp.ge.s32.totalorder %s3367_s29, 1 }
  0x12   : > { %p678_p2 = scmp.lt.s32.totalorder %s3367_s29, 3  ;;  %s4117_s0 = smov (%p39_p0, %s38_s0), 0 }
  0x13   : > { %4083 = sst [smem:[#allocation9_spill]] %s4117_s0 }
  0x14   : > { %p679_p3 = pnand %p2859_p1, %p678_p2 }
  0x16   : > { %682 = sbr.rel (%p679_p3) target bundleno = 2949 (0xb85), region = 92 }
  0x1d   : > { %p800_p4 = scmp.lt.s32.totalorder %s3359_s27, 1  ;;  %s4086_s28 = sld [smem:[#allocation13_spill]] }
  0x1e   : > { %s4087_s3 = sld [smem:[#allocation15_spill]]  ;;  %s4088_s4 = sld [smem:[#allocation16_spill]] }
  0x1f   : > { %s3502_s19 = scalar_select %p800_p4, %s3359_s27, 1 }
  0x20   : > { %s4089_s6 = sld [smem:[#allocation18_spill]]  ;;  %s4091_s10 = sld [smem:[#allocation19_spill]] }
  0x21   : > { %s3127_s1 = smul.u32 80, %s3502_s19  ;;  %s2950_s23 = sshll.u32 %s3502_s19, 4 }
  0x22   : > { %s2954_s2 = sshll.u32 %s3502_s19, 5  ;;  %s4092_s12 = sld [smem:[#allocation21_spill]] }
  0x23   : > { %s3517_s18 = scalar_lea.vmem %s4086_s28, %s3127_s1  ;;  %s4094_s11 = sld [smem:[#allocation20_spill]] }
  0x24   : > { %s3522_s17 = scalar_lea.vmem %s4087_s3, %s2950_s23  ;;  %s3527_s22 = scalar_lea.vmem %s4088_s4, %s2950_s23 }
  0x25   : > { %s852_s3 = scalar_lea.vmem %s4055_s13, %s3502_s19  ;;  %s3569_s20 = scalar_lea.vmem %s4056_s14, %s2950_s23 }
  0x26   : > { %s3532_s25 = scalar_lea.vmem %s4089_s6, %s2950_s23  ;;  %s3549_s4 = scalar_lea.vmem %s4091_s10, %s2950_s23 }
  0x27   : > { %4090 = sst [smem:[#allocation10_spill]] %s3532_s25  ;;  %s860_s6 = scalar_lea.vmem %s4057_s15, %s3502_s19 }
  0x28   : > { %s3555_s25 = scalar_lea.vmem %s4092_s12, %s2950_s23  ;;  %s863_s12 = scalar_lea.vmem %s4058_s16, %s3502_s19 }
  0x29   : > { %4093 = sst [smem:[#allocation11_spill]] %s3555_s25  ;;  %s3560_s0 = scalar_lea.vmem %s4094_s11, %s2954_s2 }
  0x2a   : > { %s4095_s30 = sld [smem:[#allocation22_spill]]  ;;  %s4096_s25 = sld [smem:[#allocation6_spill]] }
  0x30   : > { %s866_s11 = scalar_lea.vmem %s4095_s30, %s3502_s19  ;;  %p2875_p5 = scmp.ne.s32.totalorder %s4096_s25, 0 }
  0x31   : > { %s4097_s5 = sld [smem:[#allocation12_spill]] (!%p2875_p5)  ;;  %vm877_vm0 = vcmask (!%p2875_p5), 261120  }
  0x32   : > { %872 = sbr.rel (%p2875_p5) target bundleno = 58 (0x3a), region = 96 }
  0x37   : > { %v873_v0 = vld [vmem:[%s4097_s5] sm:$0xff] (!%p2875_p5)  ;;  %v874_v1 = vld [vmem:[%s4097_s5 + $0x8] sm:$0xff] (!%p2875_p5)  ;;  %v875_v2 = vld [vmem:[%s4097_s5 + $0x10] sm:$0xff] (!%p2875_p5) }
  0x38   : > { %878 = vst.msk [vmem:[#allocation2] sm:$0xff] (!%p2875_p5), %vm877_vm0, %v873_v0  ;;  %879 = vst.msk [vmem:[#allocation2 + $0x8] sm:$0xff] (!%p2875_p5), %vm877_vm0, %v874_v1  ;;  %v876_v3 = vld [vmem:[%s4097_s5 + $0x18] sm:$0xff] (!%p2875_p5) }
  0x39   : > { %880 = vst.msk [vmem:[#allocation2 + $0x10] sm:$0xff] %vm877_vm0, %v875_v2  ;;  %881 = vst.msk [vmem:[#allocation2 + $0x18] sm:$0xff] %vm877_vm0, %v876_v3 }
  0x3a PF: > { %vm892_vm1 = vcmask 1041408   ;;  %v3369_v11 = vmov 0   ;;  %v3173_v12 = vld [vmem:[%s3517_s18] sm:$0xff]   ;;  %vm898_vm2 = vsmask.f32 7424  ;;  %v3174_v16 = vld [vmem:[%s3517_s18 + $0x8] sm:$0xff]  }
  0x3b   : > { %1076 = vmatprep.subr.bf16.mxu0 %v3369_v11  ;;  %vm936_vm3 = vsmask.f32 6400  ;;  %v3175_v31 = vld [vmem:[%s3517_s18 + $0x10] sm:$0xff]   ;;  %vm925_vm4 = vcmask 1046528   ;;  %s3370_s25 = smov 32   ;;  %s3371_s26 = smov 96  }
  0x3c   : > { %1077 = vmatpush1.bf16.msra.mxu0 %v3173_v12  ;;  %v3176_v45 = vld [vmem:[%s3517_s18 + $0x18] sm:$0xff]   ;;  %vm959_vm5 = vcmask 1045504   ;;  %v3177_v54 = vld [vmem:[%s3517_s18 + $0x20] sm:$0xff]   ;;  %s3372_s2 = smov 64   ;;  %vm966_vm6 = vcmask 261120   ;;  %v3178_v62 = vld [vmem:[%s3517_s18 + $0x28] sm:$0xff]  }
  0x3d   : > { %1078 = vmatprep.subr.bf16.mxu0 %v3369_v11  ;;  %v3179_v63 = vld [vmem:[%s3517_s18 + $0x30] sm:$0xff]   ;;  %v3180_v0 = vld [vmem:[%s3517_s18 + $0x38] sm:$0xff]   ;;  %v3181_v1 = vld [vmem:[%s3517_s18 + $0x40] sm:$0xff]   ;;  %vm971_vm7 = vcmask 523264   ;;  %vm976_vm8 = vcmask 785408   ;;  %vm3374_vm9 = vmmov 0  }
  0x3e   : > { %v3182_v2 = vld [vmem:[%s3517_s18 + $0x48] sm:$0xff]   ;;  %s4098_s27 = sld [smem:[#allocation14_spill]]  ;;  %s3375_s23 = smov 88   ;;  %vm1130_vm10 = vcmask 64512   ;;  %vm1550_vm11 = vcmask 130048  }
  0x3f   : > { %s3376_s29 = smov 80   ;;  %s3377_s28 = smov 120  }
  0x40   : > { %v882_v4 = vld [vmem:[#allocation2] sm:$0xff]  ;;  %v883_v5 = vld [vmem:[#allocation2 + $0x8] sm:$0xff]  ;;  %v884_v7 = vld [vmem:[#allocation2 + $0x10] sm:$0xff]  ;;  %1079 = vmatpush1.bf16.msra.mxu0 %v3174_v16  ;;  %s3378_s21 = smov 112   ;;  %s3379_s10 = smov 104  }
  0x41   : > { %v3596_v6 = vpack.c.bf16 %v883_v5, %v882_v4  ;;  %v885_v8 = vld [vmem:[#allocation2 + $0x18] sm:$0xff]  ;;  %1080 = vmatprep.subr.bf16.mxu0 %v3369_v11  ;;  %s3380_s24 = smov 72  }
  0x42   : > { %v3601_v10 = vpack.c.bf16 %v885_v8, %v884_v7 }
  0x43   : > { %v3599_v9 = vrot.slane %v3596_v6, 6 }
  0x44   : > { %v891_v19 = vrot.slane %v3601_v10, 6  ;;  %1081 = vmatpush1.bf16.msra.mxu0 %v3175_v31  ;;  %s4099_s1 = scalar_lea.vmem %s4098_s27, %s3502_s19  ;;  %s4103_s27 = scalar_lea.vmem %s4049_s7, %s3502_s19 }
  0x45   : > { %v3607_v13 = vsel %vm892_vm1, 0, %v3599_v9  ;;  %v905_v14 = vshll.u32 %v3599_v9, 16  ;;  %v940_v15 = vshrl.u32 %v3599_v9, 16  ;;  %v927_v22 = vrot.slane %v3599_v9, 1  ;;  %1082 = vmatprep.subr.bf16.mxu0 %v3369_v11 }
  0x46   : > { %v899_v17 = vshrl.u32 %v3607_v13, 16  ;;  %v901_v18 = vshll.u32 %v3607_v13, 16  ;;  %v926_v28 = vrot.slane %v3607_v13, 1  ;;  %v3619_v29 = vsel %vm892_vm1, 0, %v891_v19 }
  0x47   : > { %v942_v20 = vrot.slane %v940_v15, 1  ;;  %v943_v21 = vrot.slane %v905_v14, 2  ;;  %v907_v24 = vrot.slane %v905_v14, 1  ;;  %v915_v30 = vshll.u32 %v891_v19, 16 }
  0x48   : > { %v903_v23 = vrot.slane %v901_v18, 1  ;;  %v937_v25 = vrot.slane %v899_v17, 1  ;;  %v938_v26 = vrot.slane %v901_v18, 2  ;;  %v909_v34 = vshrl.u32 %v3619_v29, 16  ;;  %1083 = vmatpush1.bf16.msra.mxu0 %v3176_v45 }
  0x49   : > { %v944_v27 = vor.u32 %v943_v21, %v942_v20  ;;  %v911_v35 = vshll.u32 %v3619_v29, 16  ;;  %v917_v36 = vrot.slane %v915_v30, 1  ;;  %v949_v37 = vshrl.u32 %v891_v19, 16  ;;  %1084 = vmatprep.subr.bf16.mxu0 %v3369_v11 }
  0x4a   : > { %v904_v32 = vor.u32 %v903_v23, %v899_v17  ;;  %v939_v33 = vor.u32 %v938_v26, %v937_v25  ;;  %v952_v38 = vrot.slane %v915_v30, 2  ;;  %v946_v42 = vrot.slane %v909_v34, 1 }
  0x4b   : > { %v913_v41 = vrot.slane %v911_v35, 1  ;;  %v947_v43 = vrot.slane %v911_v35, 2  ;;  %v951_v44 = vrot.slane %v949_v37, 1  ;;  %v928_v46 = vsel %vm925_vm4, %v926_v28, %v927_v22 }
  0x4c   : > { %v908_v39 = vsel %vm898_vm2, %v904_v32, %v907_v24  ;;  %v945_v40 = vsel %vm936_vm3, %v939_v33, %v944_v27  ;;  %v929_v48 = vrot.slane %v3619_v29, 1  ;;  %v930_v49 = vrot.slane %v891_v19, 1  ;;  %1085 = vmatpush1.bf16.msra.mxu0 %v3177_v54  ;;  %v3183_v54 = vld [vmem:[%s3522_s17] sm:$0xff]  }
  0x4d   : > { %919 = vrot.lane.b32.xlu0 %v908_v39, %s3370_s25  ;;  %955 = vrot.lane.b32.xlu1 %v945_v40, %s3371_s26  ;;  %v914_v47 = vor.u32 %v913_v41, %v909_v34  ;;  %v948_v50 = vor.u32 %v947_v43, %v946_v42  ;;  %v953_v51 = vor.u32 %v952_v38, %v951_v44  ;;  %v960_v52 = vrot.slane %v3607_v13, 2 }
  0x4e   : > { %v961_v55 = vrot.slane %v3599_v9, 2  ;;  %v963_v56 = vrot.slane %v3619_v29, 2  ;;  %v964_v57 = vrot.slane %v891_v19, 2  ;;  %v931_v58 = vsel %vm925_vm4, %v929_v48, %v930_v49  ;;  %1086 = vmatprep.subr.bf16.mxu0 %v3369_v11 }
  0x4f   : > { %v918_v53 = vsel %vm898_vm2, %v914_v47, %v917_v36  ;;  %v954_v59 = vsel %vm936_vm3, %v948_v50, %v953_v51  ;;  %v3373_v18 = vmov 0.0  }
  0x50   : > { %v962_v60 = vsel %vm959_vm5, %v960_v52, %v961_v55  ;;  %v965_v61 = vsel %vm959_vm5, %v963_v56, %v964_v57  ;;  %1087 = vmatpush1.bf16.msra.mxu0 %v3178_v62  ;;  %3007 = vmatprep.subr.bf16.mxu1 %v3373_v18 }
  0x51   : > { %932 = vrot.lane.b32.xlu0 %v928_v46, %s3372_s2  ;;  %921 = vrot.lane.b32.xlu1 %v918_v53, %s3370_s25 }
  0x52   : > { %2887 = vmatprep.mubr.msk.bf16.mxu0 %vm966_vm6, %v962_v60  ;;  %1088 = vmatprep.subr.bf16.mxu0 %v3369_v11 }
  0x53   : > { %3009 = vmatprep.mubr.msk.bf16.mxu1 %vm3374_vm9, %v3373_v18 }
  0x54   : > { %1089 = vmatpush1.bf16.msra.mxu0 %v3179_v63 }
  0x55   : > { %934 = vrot.lane.b32.xlu0 %v931_v58, %s3372_s2  ;;  %957 = vrot.lane.b32.xlu1 %v954_v59, %s3371_s26 }
  0x56   : > { %1090 = vmatprep.subr.bf16.mxu0 %v3369_v11 }
  0x58   : > { %1091 = vmatpush1.bf16.msra.mxu0 %v3180_v0 }
  0x59   : > { %1092 = vmatprep.subr.bf16.mxu0 %v3369_v11 }
  0x5c   : > { %1093 = vmatpush1.bf16.msra.mxu0 %v3181_v1 }
  0x5d   : > { %1094 = vmatprep.subr.bf16.mxu0 %v3369_v11 }
  0x60   : > { %1095 = vmatpush1.bf16.msra.mxu0 %v3182_v2 }
  0x61   : > { %3043 = vmatprep.subr.bf16.mxu0 %v3373_v18 }
  0xbf   : > { %v920_v3 = vpop.permute.xlu0 %919  ;;  %v956_v4 = vpop.permute.xlu1 %955 }
  0xc0   : > { %v968_v5 = vsel %vm966_vm6, %v3607_v13, %v920_v3  ;;  %v2876_v13 = vld [vmem:[%s4099_s1] ss:$0 sm:$0xff] }
  0xc3   : > { %v933_v7 = vpop.permute.xlu0 %932  ;;  %v922_v9 = vpop.permute.xlu1 %921 }
  0xc4   : > { %v973_v8 = vsel %vm971_vm7, %v968_v5, %v933_v7  ;;  %v970_v14 = vsel %vm966_vm6, %v3619_v29, %v922_v9  ;;  %v3184_v5 = vld [vmem:[%s3522_s17 + $0x8] sm:$0xff]   ;;  %s4100_s17 = sld [smem:[#allocation10_spill]] }
  0xc5   : > { %v978_v12 = vsel %vm976_vm8, %v973_v8, %v956_v4 }
  0xc6   : > { %1109 = vmatmul.mubr.bf16.vlgmr.msra.gmra.mrb[0].mxu0 %v978_v12 }
  0xc7   : > { %v935_v15 = vpop.permute.xlu0 %934  ;;  %2888 = vmatprep.mubr.msk.bf16.mxu0 %vm966_vm6, %v965_v61  ;;  %v958_v16 = vpop.permute.xlu1 %957 }
  0xc8   : > { %v975_v11 = vsel %vm971_vm7, %v970_v14, %v935_v15 }
  0xc9   : > { %v981_v17 = vsel %vm976_vm8, %v975_v11, %v958_v16 }
  0xce   : > { %1117 = vmatmul.mubr.bf16.gmra.mrb[4].mxu0 %v981_v17 }
  0xcf   : > { %3045 = vmatprep.mubr.msk.bf16.mxu0 %vm3374_vm9, %v3373_v18 }
 0x199   : > { %v1110_v19 = vpop.f32.mrb[0].mxu0 }
 0x19a   : > { %v1112_v20 = vpop.f32.mrb[1].mxu0  ;;  %v1111_v22 = vadd.f32 %v2876_v13, %v1110_v19 }
 0x19b   : > { %v1113_v21 = vpop.f32.mrb[2].mxu0 }
 0x19c   : > { %v1114_v23 = vadd.f32 %v2876_v13, %v1113_v21  ;;  %v1115_v24 = vpop.f32.mrb[3].mxu0 }
 0x19e   : > { %v1125_v25 = vpack.c.bf16 %v1114_v23, %v1111_v22 }
 0x1a0   : > { %1128 = vrot.lane.b32.xlu0 %v1125_v25, %s3371_s26 }
 0x1a1   : > { %v1118_v26 = vpop.f32.mrb[4].mxu0 }
 0x1a2   : > { %v1120_v27 = vpop.f32.mrb[5].mxu0  ;;  %v1119_v29 = vadd.f32 %v2876_v13, %v1118_v26 }
 0x1a3   : > { %v1121_v28 = vpop.f32.mrb[6].mxu0 }
 0x1a4   : > { %v1122_v30 = vadd.f32 %v2876_v13, %v1121_v28  ;;  %1234 = vrot.lane.b32.xlu0 %v1125_v25, %s3375_s23  ;;  %v1123_v31 = vpop.f32.mrb[7].mxu0 }
 0x1a6   : > { %v1126_v32 = vpack.c.bf16 %v1122_v30, %v1119_v29 }
 0x1a8   : > { %1285 = vrot.lane.b32.xlu0 %v1126_v32, %s3375_s23  ;;  %1179 = vrot.lane.b32.xlu1 %v1126_v32, %s3371_s26  ;;  %s4101_s26 = sld [smem:[#allocation17_spill]]  ;;  %s4104_s23 = scalar_lea.vmem %s4050_s8, %s3502_s19 }
 0x1ac   : > { %1340 = vrot.lane.b32.xlu0 %v1125_v25, %s3376_s29  ;;  %1232 = vrot.lane.b32.xlu1 %v1125_v25, %s3377_s28 }
 0x1ae   : > { %s4102_s2 = scalar_lea.vmem %s4101_s26, %s3502_s19 }
 0x1b0   : > { %1391 = vrot.lane.b32.xlu0 %v1126_v32, %s3376_s29  ;;  %1283 = vrot.lane.b32.xlu1 %v1126_v32, %s3377_s28 }
 0x1b4   : > { %1389 = vrot.lane.b32.xlu0 %v1126_v32, %s3378_s21  ;;  %1338 = vrot.lane.b32.xlu1 %v1125_v25, %s3378_s21  ;;  %s4105_s21 = scalar_lea.vmem %s4051_s9, %s3502_s19 }
 0x1b8   : > { %1444 = vrot.lane.b32.xlu0 %v1125_v25, %s3379_s10  ;;  %1446 = vrot.lane.b32.xlu1 %v1125_v25, %s3380_s24 }
 0x1bc   : > { %1497 = vrot.lane.b32.xlu1 %v1126_v32, %s3380_s24 }
 0x1c0   : > { %1495 = vrot.lane.b32.xlu1 %v1126_v32, %s3379_s10  ;;  %s4106_s10 = sld [smem:[#allocation11_spill]] }
 0x212   : > { %v1129_v33 = vpop.permute.xlu0 %1128 }
 0x213   : > { %v1135_v34 = vsel %vm1130_vm10, %v1129_v33, 0 }
 0x214   : > { %3008 = vmatpush3.bf16.xpose.msra.mxu1 %v1135_v34 }
 0x215   : > { %3013 = vmatprep.subr.bf16.mxu1 %v3373_v18 }
 0x216   : > { %v1235_v35 = vpop.permute.xlu0 %1234 }
 0x217   : > { %v1240_v42 = vsel %vm1130_vm10, %v1235_v35, 0 }
 0x21a   : > { %v1180_v36 = vpop.permute.xlu1 %1179  ;;  %v1286_v37 = vpop.permute.xlu0 %1285 }
 0x21b   : > { %v1185_v38 = vsel %vm1130_vm10, %v1180_v36, 0  ;;  %3010 = vmatmul.mubr.msk.bf16.vlgmr.msra.gmra.mrb[0].mxu1 %vm1130_vm10, %v1125_v25  ;;  %v1291_v46 = vsel %vm1130_vm10, %v1286_v37, 0 }
 0x21c   : > { %3014 = vmatpush3.bf16.xpose.msra.mxu1 %v1185_v38  ;;  %3015 = vmatprep.mubr.msk.bf16.mxu1 %vm3374_vm9, %v3373_v18 }
 0x21d   : > { %3019 = vmatprep.subr.bf16.mxu1 %v3373_v18 }
 0x21e   : > { %v1233_v39 = vpop.permute.xlu1 %1232  ;;  %v1341_v40 = vpop.permute.xlu0 %1340 }
 0x21f   : > { %v1346_v50 = vsel %vm1130_vm10, %v1341_v40, 0 }
 0x222   : > { %v1284_v41 = vpop.permute.xlu1 %1283  ;;  %v1392_v43 = vpop.permute.xlu0 %1391 }
 0x223   : > { %3016 = vmatmul.mubr.msk.bf16.vlgmr.msra.gmra.mrb[4].mxu1 %vm1130_vm10, %v1126_v32  ;;  %v1397_v51 = vsel %vm1130_vm10, %v1392_v43, 0 }
 0x224   : > { %3020 = vmatpush3.bf16.xpose.msra.mxu1 %v1240_v42  ;;  %3021 = vmatprep.mubr.msk.bf16.mxu1 %vm3374_vm9, %v3373_v18 }
 0x225   : > { %3025 = vmatprep.subr.bf16.mxu1 %v3373_v18 }
 0x226   : > { %v1339_v44 = vpop.permute.xlu1 %1338  ;;  %v1390_v48 = vpop.permute.xlu0 %1389 }
 0x22a   : > { %v1447_v45 = vpop.permute.xlu1 %1446  ;;  %v1445_v49 = vpop.permute.xlu0 %1444 }
 0x22b   : > { %v1452_v47 = vsel %vm1130_vm10, %v1447_v45, 0  ;;  %3022 = vmatmul.mubr.msk.bf16.vlgmr.msra.gmra.mrb[8].mxu1 %vm1130_vm10, %v1233_v39 }
 0x22c   : > { %3026 = vmatpush3.bf16.xpose.msra.mxu1 %v1291_v46  ;;  %3044 = vmatpush3.bf16.xpose.msra.mxu0 %v1452_v47 }
 0x22d   : > { %3027 = vmatprep.mubr.msk.bf16.mxu1 %vm3374_vm9, %v3373_v18  ;;  %3031 = vmatprep.subr.bf16.mxu1 %v3373_v18 }
 0x22e   : > { %v1498_v52 = vpop.permute.xlu1 %1497  ;;  %3055 = vmatprep.subr.bf16.mxu0 %v3183_v54 }
 0x22f   : > { %v1503_v53 = vsel %vm1130_vm10, %v1498_v52, 0 }
 0x233   : > { %3028 = vmatmul.mubr.msk.bf16.vlgmr.msra.gmra.mrb[12].mxu1 %vm1130_vm10, %v1284_v41  ;;  %3046 = vmatmul.mubr.msk.bf16.vlgmr.msra.gmra.mrb[8].mxu0 %vm1130_vm10, %v1445_v49 }
 0x234   : > { %3032 = vmatpush3.bf16.xpose.msra.mxu1 %v1346_v50  ;;  %3033 = vmatprep.mubr.msk.bf16.mxu1 %vm3374_vm9, %v3373_v18 }
 0x235   : > { %3037 = vmatprep.subr.bf16.mxu1 %v3373_v18  ;;  %3059 = vmatprep.mubr.msk.bf16.mxu0 %vm966_vm6, %v3596_v6  ;;  %v1496_v6 = vpop.permute.xlu1 %1495 }
 0x236   : > { %3056 = vmatpush3.bf16.msra.mxu0 %v3183_v54 }
 0x237   : > { %3057 = vmatprep.subr.bf16.mxu0 %v3184_v5 }
 0x23a   : > { %3058 = vmatpush3.bf16.msra.mxu0 %v3184_v5 }
 0x23b   : > { %3034 = vmatmul.mubr.msk.bf16.vlgmr.msra.gmra.mrb[16].mxu1 %vm1130_vm10, %v1339_v44  ;;  %3069 = vmatprep.subr.bf16.mxu0 %v3373_v18 }
 0x23c   : > { %3038 = vmatpush3.bf16.xpose.msra.mxu1 %v1397_v51  ;;  %3039 = vmatprep.mubr.msk.bf16.mxu1 %vm3374_vm9, %v3373_v18 }
 0x23d   : > { %3049 = vmatprep.subr.bf16.mxu1 %v3373_v18  ;;  %3060 = vmatmul.mubr.msk.bf16.vlgmr.msra.gmra.mrb[12].mxu0 %vm966_vm6, %v3601_v10 }
 0x23e   : > { %3071 = vmatprep.mubr.msk.bf16.mxu0 %vm3374_vm9, %v3373_v18 }
 0x243   : > { %3040 = vmatmul.mubr.msk.bf16.vlgmr.msra.gmra.mrb[20].mxu1 %vm1130_vm10, %v1390_v48 }
 0x244   : > { %3050 = vmatpush3.bf16.xpose.msra.mxu1 %v1503_v53  ;;  %3051 = vmatprep.mubr.msk.bf16.mxu1 %vm3374_vm9, %v3373_v18 }
 0x245   : > { %3063 = vmatprep.subr.bf16.mxu1 %v3373_v18 }
 0x24b   : > { %3052 = vmatmul.mubr.msk.bf16.vlgmr.msra.gmra.mrb[24].mxu1 %vm1130_vm10, %v1496_v6 }
 0x24c   : > { %3065 = vmatprep.mubr.msk.bf16.mxu1 %vm3374_vm9, %v3373_v18 }
 0x2ee   : > { %v1171_v55 = vpop.f32.mrb[0].mxu1 }
 0x2ef   : > { %v3714_v56 = vmul.f32 0.35355338, %v1171_v55  ;;  %v3011_v57 = vpop.f32.mrb[1].mxu1 }
 0x2f0   : > { %v1174_v58 = vpop.f32.mrb[2].mxu1 }
 0x2f1   : > { %v3012_v59 = vpop.f32.mrb[3].mxu1  ;;  %v1551_v60 = vsel %vm1550_vm11, %v3714_v56, -inf  ;;  %v3728_v19 = vmul.f32 0.35355338, %v1174_v58 }
 0x2f2   : > { %1552 = vmax.xlane.f32.xlu0 %v1551_v60 }
 0x2f3   : > { %v1554_v18 = vsel %vm1550_vm11, %v3728_v19, -inf }
 0x2f6   : > { %v1221_v61 = vpop.f32.mrb[4].mxu1 }
 0x2f7   : > { %v3017_v62 = vpop.f32.mrb[5].mxu1  ;;  %v3736_v22 = vmul.f32 0.35355338, %v1221_v61 }
 0x2f8   : > { %v1224_v63 = vpop.f32.mrb[6].mxu1 }
 0x2f9   : > { %v3018_v0 = vpop.f32.mrb[7].mxu1  ;;  %v3732_v21 = vmul.f32 0.35355338, %v1224_v63  ;;  %v1575_v30 = vsel %vm1550_vm11, %v3736_v22, -inf }
 0x2fb   : > { %v1578_v26 = vsel %vm1550_vm11, %v3732_v21, -inf }
 0x2fe   : > { %v1276_v1 = vpop.f32.mrb[8].mxu1 }
 0x2ff   : > { %v3023_v2 = vpop.f32.mrb[9].mxu1  ;;  %v3740_v24 = vmul.f32 0.35355338, %v1276_v1 }
 0x300   : > { %v1279_v3 = vpop.f32.mrb[10].mxu1 }
 0x301   : > { %v3024_v4 = vpop.f32.mrb[11].mxu1  ;;  %v3748_v31 = vmul.f32 0.35355338, %v1279_v3  ;;  %v1557_v32 = vsel %vm1550_vm11, %v3740_v24, -inf }
 0x303   : > { %v1560_v38 = vsel %vm1550_vm11, %v3748_v31, -inf }
 0x306   : > { %v1327_v7 = vpop.f32.mrb[12].mxu1  ;;  %v1488_v8 = vpop.f32.mrb[8].mxu0 }
 0x307   : > { %v3720_v9 = vmul.f32 0.35355338, %v1488_v8  ;;  %v3029_v12 = vpop.f32.mrb[13].mxu1  ;;  %v3047_v14 = vpop.f32.mrb[9].mxu0  ;;  %v3744_v29 = vmul.f32 0.35355338, %v1327_v7 }
 0x308   : > { %v1330_v15 = vpop.f32.mrb[14].mxu1  ;;  %v1491_v11 = vpop.f32.mrb[10].mxu0 }
 0x309   : > { %v3726_v16 = vmul.f32 0.35355338, %v1491_v11  ;;  %v3030_v17 = vpop.f32.mrb[15].mxu1  ;;  %v3048_v13 = vpop.f32.mrb[11].mxu0  ;;  %v1569_v20 = vsel %vm1550_vm11, %v3720_v9, -inf  ;;  %v1581_v35 = vsel %vm1550_vm11, %v3744_v29, -inf }
 0x30a   : > { %1570 = vmax.xlane.f32.xlu1 %v1569_v20  ;;  %v3756_v36 = vmul.f32 0.35355338, %v1330_v15 }
 0x30b   : > { %v1572_v10 = vsel %vm1550_vm11, %v3726_v16, -inf }
 0x30c   : > { %1573 = vmax.xlane.f32.xlu0 %v1572_v10  ;;  %v1584_v44 = vsel %vm1550_vm11, %v3756_v36, -inf }
 0x30e   : > { %v1382_v23 = vpop.f32.mrb[16].mxu1  ;;  %1555 = vmax.xlane.f32.xlu1 %v1554_v18 }
 0x30f   : > { %v3035_v25 = vpop.f32.mrb[17].mxu1  ;;  %v3752_v33 = vmul.f32 0.35355338, %v1382_v23 }
 0x310   : > { %v1385_v27 = vpop.f32.mrb[18].mxu1  ;;  %1579 = vmax.xlane.f32.xlu0 %v1578_v26 }
 0x311   : > { %v3036_v28 = vpop.f32.mrb[19].mxu1  ;;  %v1563_v42 = vsel %vm1550_vm11, %v3752_v33, -inf  ;;  %v3764_v43 = vmul.f32 0.35355338, %v1385_v27 }
 0x312   : > { %1576 = vmax.xlane.f32.xlu1 %v1575_v30 }
 0x313   : > { %v1566_v50 = vsel %vm1550_vm11, %v3764_v43, -inf }
 0x314   : > { %1558 = vmax.xlane.f32.xlu0 %v1557_v32 }
 0x316   : > { %v1433_v34 = vpop.f32.mrb[20].mxu1  ;;  %1582 = vmax.xlane.f32.xlu1 %v1581_v35 }
 0x317   : > { %v3041_v37 = vpop.f32.mrb[21].mxu1  ;;  %v3760_v41 = vmul.f32 0.35355338, %v1433_v34 }
 0x318   : > { %v1436_v39 = vpop.f32.mrb[22].mxu1  ;;  %1561 = vmax.xlane.f32.xlu0 %v1560_v38 }
 0x319   : > { %v3042_v40 = vpop.f32.mrb[23].mxu1  ;;  %v1587_v46 = vsel %vm1550_vm11, %v3760_v41, -inf  ;;  %v3770_v47 = vmul.f32 0.35355338, %v1436_v39 }
 0x31a   : > { %1564 = vmax.xlane.f32.xlu1 %v1563_v42 }
 0x31b   : > { %v1590_v54 = vsel %vm1550_vm11, %v3770_v47, -inf }
 0x31c   : > { %1585 = vmax.xlane.f32.xlu0 %v1584_v44 }
 0x31e   : > { %v1539_v45 = vpop.f32.mrb[24].mxu1  ;;  %1588 = vmax.xlane.f32.xlu1 %v1587_v46 }
 0x31f   : > { %v3772_v48 = vmul.f32 0.35355338, %v1539_v45  ;;  %v3053_v49 = vpop.f32.mrb[25].mxu1 }
 0x320   : > { %v1542_v51 = vpop.f32.mrb[26].mxu1  ;;  %1567 = vmax.xlane.f32.xlu0 %v1566_v50 }
 0x321   : > { %v3054_v52 = vpop.f32.mrb[27].mxu1  ;;  %v1593_v53 = vsel %vm1550_vm11, %v3772_v48, -inf  ;;  %v3778_v6 = vmul.f32 0.35355338, %v1542_v51 }
 0x322   : > { %1594 = vmax.xlane.f32.xlu1 %v1593_v53 }
 0x323   : > { %v1596_v55 = vsel %vm1550_vm11, %v3778_v6, -inf }
 0x324   : > { %1591 = vmax.xlane.f32.xlu0 %v1590_v54 }
 0x328   : > { %1597 = vmax.xlane.f32.xlu0 %v1596_v55 }
 0x37f   : > { %v1553_v57 = vpop.xlane.xlu0 %1552 }
 0x380   : > { %v1599_v58 = vsub.f32 %v3714_v56, %v1553_v57 }
 0x382   : > { %v1615_v59 = vmul.f32 1.442695, %v1599_v58 }
 0x384   : > { %3199 = vpow2.f32 %v1615_v59 }
 0x38e   : > { %v3785_v60 = vpop.eup %3199 }
 0x38f   : > { %v1647_v61 = vsel %vm1550_vm11, %v3785_v60, 0.0 }
 0x390   : > { %1648 = vadd.xlane.f32.xlu1 %v1647_v61 }
 0x397   : > { %v1571_v62 = vpop.xlane.xlu1 %1570 }
 0x398   : > { %v1605_v63 = vsub.f32 %v3720_v9, %v1571_v62 }
 0x399   : > { %v1574_v0 = vpop.xlane.xlu0 %1573 }
 0x39a   : > { %v1627_v1 = vmul.f32 1.442695, %v1605_v63  ;;  %v1606_v2 = vsub.f32 %v3726_v16, %v1574_v0 }
 0x39b   : > { %v1556_v3 = vpop.xlane.xlu1 %1555 }
 0x39c   : > { %3201 = vpow2.f32 %v1627_v1  ;;  %v1600_v4 = vsub.f32 %v3728_v19, %v1556_v3  ;;  %v1629_v7 = vmul.f32 1.442695, %v1606_v2 }
 0x39d   : > { %v1580_v56 = vpop.xlane.xlu0 %1579 }
 0x39e   : > { %v1608_v5 = vsub.f32 %v3732_v21, %v1580_v56  ;;  %v1617_v8 = vmul.f32 1.442695, %v1600_v4 }
 0x39f   : > { %v1577_v12 = vpop.xlane.xlu1 %1576 }
 0x3a0   : > { %3203 = vpow2.f32 %v1617_v8  ;;  %v1607_v14 = vsub.f32 %v3736_v22, %v1577_v12  ;;  %v1633_v11 = vmul.f32 1.442695, %v1608_v5 }
 0x3a1   : > { %v1559_v15 = vpop.xlane.xlu0 %1558  ;;  %3205 = vpow2.f32 %v1629_v7 }
 0x3a2   : > { %v1601_v9 = vsub.f32 %v3740_v24, %v1559_v15  ;;  %v1631_v17 = vmul.f32 1.442695, %v1607_v14  ;;  %v3061_v14 = vpop.f32.mrb[12].mxu0 }
 0x3a3   : > { %v1583_v13 = vpop.xlane.xlu1 %1582  ;;  %v1811_v15 = vpop.f32.mrb[13].mxu0 }
 0x3a4   : > { %v1619_v16 = vmul.f32 1.442695, %v1601_v9  ;;  %3207 = vpow2.f32 %v1631_v17  ;;  %v1609_v19 = vsub.f32 %v3744_v29, %v1583_v13 }
 0x3a5   : > { %v1562_v20 = vpop.xlane.xlu0 %1561  ;;  %3209 = vpow2.f32 %v1633_v11  ;;  %v3062_v11 = vpop.f32.mrb[14].mxu0 }
 0x3a6   : > { %v1602_v21 = vsub.f32 %v3748_v31, %v1562_v20  ;;  %v3797_v10 = vpop.eup %3201  ;;  %3211 = vpow2.f32 %v1619_v16  ;;  %v1635_v23 = vmul.f32 1.442695, %v1609_v19  ;;  %v1814_v9 = vpop.f32.mrb[15].mxu0  ;;  %v1829_v16 = vpack.c.bf16 %v3062_v11, %v3061_v14 }
 0x3a7   : > { %v1565_v18 = vpop.xlane.xlu1 %1564  ;;  %v1665_v24 = vsel %vm1550_vm11, %v3797_v10, 0.0  ;;  %v1828_v17 = vpack.c.bf16 %v1814_v9, %v1811_v15 }
 0x3a8   : > { %v1621_v22 = vmul.f32 1.442695, %v1602_v21  ;;  %v1603_v25 = vsub.f32 %v3752_v33, %v1565_v18  ;;  %1666 = vadd.xlane.f32.xlu1 %v1665_v24  ;;  %3213 = vpow2.f32 %v1635_v23  ;;  %3070 = vmatpush3.bf16.msra.mxu0 %v1829_v16 }
 0x3a9   : > { %v1586_v26 = vpop.xlane.xlu0 %1585  ;;  %3064 = vmatpush3.bf16.msra.mxu1 %v1828_v17 }
 0x3aa   : > { %v1610_v27 = vsub.f32 %v3756_v36, %v1586_v26  ;;  %v3803_v28 = vpop.eup %3203  ;;  %3215 = vpow2.f32 %v1621_v22  ;;  %v1623_v29 = vmul.f32 1.442695, %v1603_v25 }
 0x3ab   : > { %v1589_v31 = vpop.xlane.xlu1 %1588  ;;  %v1650_v32 = vsel %vm1550_vm11, %v3803_v28, 0.0  ;;  %v3807_v34 = vpop.eup %3205 }
 0x3ac   : > { %v1637_v30 = vmul.f32 1.442695, %v1610_v27  ;;  %v1611_v35 = vsub.f32 %v3760_v41, %v1589_v31  ;;  %1651 = vadd.xlane.f32.xlu0 %v1650_v32  ;;  %3217 = vpow2.f32 %v1623_v29  ;;  %v1668_v45 = vsel %vm1550_vm11, %v3807_v34, 0.0 }
 0x3ad   : > { %v1568_v33 = vpop.xlane.xlu0 %1567 }
 0x3ae   : > { %v1604_v37 = vsub.f32 %v3764_v43, %v1568_v33  ;;  %v3811_v38 = vpop.eup %3207  ;;  %3219 = vpow2.f32 %v1637_v30  ;;  %v1639_v36 = vmul.f32 1.442695, %v1611_v35 }
 0x3af   : > { %v3813_v39 = vpop.eup %3209  ;;  %v1595_v42 = vpop.xlane.xlu1 %1594  ;;  %v1671_v44 = vsel %vm1550_vm11, %v3811_v38, 0.0 }
 0x3b0   : > { %v1625_v40 = vmul.f32 1.442695, %v1604_v37  ;;  %v3819_v41 = vpop.eup %3211  ;;  %v1613_v46 = vsub.f32 %v3772_v48, %v1595_v42  ;;  %1672 = vadd.xlane.f32.xlu1 %v1671_v44  ;;  %1669 = vadd.xlane.f32.xlu0 %v1668_v45  ;;  %3221 = vpow2.f32 %v1639_v36  ;;  %v1674_v53 = vsel %vm1550_vm11, %v3813_v39, 0.0 }
 0x3b1   : > { %v1592_v43 = vpop.xlane.xlu0 %1591  ;;  %v1653_v54 = vsel %vm1550_vm11, %v3819_v41, 0.0 }
 0x3b2   : > { %v1612_v49 = vsub.f32 %v3770_v47, %v1592_v43  ;;  %3223 = vpow2.f32 %v1625_v40  ;;  %v1643_v50 = vmul.f32 1.442695, %v1613_v46  ;;  %v3823_v51 = vpop.eup %3213 }
 0x3b3   : > { %v1677_v59 = vsel %vm1550_vm11, %v3823_v51, 0.0 }
 0x3b4   : > { %v1641_v52 = vmul.f32 1.442695, %v1612_v49  ;;  %v3829_v55 = vpop.eup %3215  ;;  %1675 = vadd.xlane.f32.xlu0 %v1674_v53  ;;  %1654 = vadd.xlane.f32.xlu1 %v1653_v54  ;;  %3225 = vpow2.f32 %v1643_v50 }
 0x3b5   : > { %v1598_v48 = vpop.xlane.xlu0 %1597  ;;  %v1656_v61 = vsel %vm1550_vm11, %v3829_v55, 0.0 }
 0x3b6   : > { %v1614_v57 = vsub.f32 %v3778_v6, %v1598_v48  ;;  %3227 = vpow2.f32 %v1641_v52  ;;  %v3832_v47 = vpop.eup %3217 }
 0x3b7   : > { %v1659_v6 = vsel %vm1550_vm11, %v3832_v47, 0.0 }
 0x3b8   : > { %v1645_v58 = vmul.f32 1.442695, %v1614_v57  ;;  %v3838_v62 = vpop.eup %3219  ;;  %1678 = vadd.xlane.f32.xlu1 %v1677_v59  ;;  %1657 = vadd.xlane.f32.xlu0 %v1656_v61 }
 0x3b9   : > { %v1680_v0 = vsel %vm1550_vm11, %v3838_v62, 0.0 }
 0x3ba   : > { %3229 = vpow2.f32 %v1645_v58  ;;  %v3840_v63 = vpop.eup %3221 }
 0x3bb   : > { %v1683_v3 = vsel %vm1550_vm11, %v3840_v63, 0.0 }
 0x3bc   : > { %v3846_v1 = vpop.eup %3223  ;;  %1660 = vadd.xlane.f32.xlu1 %v1659_v6  ;;  %1681 = vadd.xlane.f32.xlu0 %v1680_v0 }
 0x3bd   : > { %v1662_v4 = vsel %vm1550_vm11, %v3846_v1, 0.0 }
 0x3be   : > { %v3848_v2 = vpop.eup %3225 }
 0x3bf   : > { %v1689_v5 = vsel %vm1550_vm11, %v3848_v2, 0.0 }
 0x3c0   : > { %v3854_v56 = vpop.eup %3227  ;;  %1684 = vadd.xlane.f32.xlu1 %v1683_v3  ;;  %1663 = vadd.xlane.f32.xlu0 %v1662_v4 }
 0x3c1   : > { %v1686_v7 = vsel %vm1550_vm11, %v3854_v56, 0.0 }
 0x3c4   : > { %v3860_v8 = vpop.eup %3229  ;;  %1690 = vadd.xlane.f32.xlu1 %v1689_v5  ;;  %1687 = vadd.xlane.f32.xlu0 %v1686_v7 }
 0x3c5   : > { %v1692_v12 = vsel %vm1550_vm11, %v3860_v8, 0.0 }
 0x3c8   : > { %1693 = vadd.xlane.f32.xlu0 %v1692_v12 }
 0x41d   : > { %v1649_v13 = vpop.xlane.xlu1 %1648 }
 0x41e   : > { %3231 = vrcp.f32 %v1649_v13 }
 0x428   : > { %v3232_v29 = vpop.eup %3231 }
 0x429   : > { %v1711_v43 = vmul.f32 %v3232_v29, %v3785_v60 }
 0x42b   : > { %v1727_v59 = vsel %vm1550_vm11, %v1711_v43, 0.0 }
 0x435   : > { %v1667_v19 = vpop.xlane.xlu1 %1666 }
 0x436   : > { %3233 = vrcp.f32 %v1667_v19 }
 0x439   : > { %v1652_v20 = vpop.xlane.xlu0 %1651 }
 0x43d   : > { %v1673_v21 = vpop.xlane.xlu1 %1672  ;;  %v1670_v23 = vpop.xlane.xlu0 %1669 }
 0x440   : > { %v3234_v32 = vpop.eup %3233 }
 0x441   : > { %v1655_v22 = vpop.xlane.xlu1 %1654  ;;  %v1676_v18 = vpop.xlane.xlu0 %1675 }
 0x442   : > { %3235 = vrcp.f32 %v1655_v22 }
 0x443   : > { %3237 = vrcp.f32 %v1652_v20 }
 0x445   : > { %v1679_v24 = vpop.xlane.xlu1 %1678  ;;  %v1658_v25 = vpop.xlane.xlu0 %1657 }
 0x446   : > { %3239 = vrcp.f32 %v1658_v25 }
 0x447   : > { %3241 = vrcp.f32 %v1673_v21 }
 0x448   : > { %3243 = vrcp.f32 %v1670_v23 }
 0x449   : > { %v1661_v26 = vpop.xlane.xlu1 %1660  ;;  %v1682_v27 = vpop.xlane.xlu0 %1681 }
 0x44a   : > { %3245 = vrcp.f32 %v1661_v26 }
 0x44b   : > { %3247 = vrcp.f32 %v1679_v24 }
 0x44c   : > { %3249 = vrcp.f32 %v1682_v27  ;;  %v3236_v35 = vpop.eup %3235 }
 0x44d   : > { %3251 = vrcp.f32 %v1676_v18  ;;  %v1685_v30 = vpop.xlane.xlu1 %1684  ;;  %v1664_v31 = vpop.xlane.xlu0 %1663  ;;  %v1713_v44 = vmul.f32 %v3236_v35, %v3819_v41  ;;  %v3185_v35 = vld [vmem:[%s3527_s22] sm:$0xff]  }
 0x44e   : > { %3253 = vrcp.f32 %v1685_v30  ;;  %v3238_v33 = vpop.eup %3237  ;;  %3075 = vmatprep.subr.bf16.mxu1 %v3185_v35 }
 0x44f   : > { %3255 = vrcp.f32 %v1664_v31  ;;  %v1712_v48 = vmul.f32 %v3238_v33, %v3803_v28  ;;  %v1728_v57 = vsel %vm1550_vm11, %v1713_v44, 0.0  ;;  %v3186_v33 = vld [vmem:[%s4100_s17] sm:$0xff]  }
 0x450   : > { %v3240_v37 = vpop.eup %3239  ;;  %v1729_v0 = vadd.f32 %v1728_v57, %v1727_v59  ;;  %3083 = vmatprep.subr.bf16.mxu0 %v3186_v33 }
 0x451   : > { %v1691_v36 = vpop.xlane.xlu1 %1690  ;;  %v1688_v40 = vpop.xlane.xlu0 %1687  ;;  %v1714_v49 = vmul.f32 %v3240_v37, %v3829_v55  ;;  %v1717_v55 = vmul.f32 %v3234_v32, %v3797_v10  ;;  %v1734_v28 = vsel %vm1550_vm11, %v1712_v48, 0.0  ;;  %v3188_v37 = vld [vmem:[%s4100_s17 + $0x8] sm:$0xff]  }
 0x452   : > { %v3242_v42 = vpop.eup %3241  ;;  %3257 = vrcp.f32 %v1691_v36 }
 0x453   : > { %v3244_v45 = vpop.eup %3243  ;;  %3259 = vrcp.f32 %v1688_v40  ;;  %v1735_v61 = vsel %vm1550_vm11, %v1714_v49, 0.0  ;;  %v1719_v4 = vmul.f32 %v3242_v42, %v3811_v38 }
 0x454   : > { %v3246_v46 = vpop.eup %3245  ;;  %v1718_v5 = vmul.f32 %v3244_v45, %v3807_v34  ;;  %v1736_v14 = vadd.f32 %v1735_v61, %v1734_v28  ;;  %v1732_v34 = vsel %vm1550_vm11, %v1717_v55, 0.0 }
 0x455   : > { %v3248_v50 = vpop.eup %3247  ;;  %v1715_v52 = vmul.f32 %v3246_v46, %v3832_v47  ;;  %v1694_v53 = vpop.xlane.xlu0 %1693 }
 0x456   : > { %v3250_v54 = vpop.eup %3249  ;;  %3261 = vrcp.f32 %v1694_v53  ;;  %v1721_v47 = vmul.f32 %v3248_v50, %v3823_v51  ;;  %v2903_v53 = vld [vmem:[%s4102_s2] ss:$0 sm:$0xff] }
 0x457   : > { %v3252_v58 = vpop.eup %3251  ;;  %v1730_v60 = vsel %vm1550_vm11, %v1715_v52, 0.0  ;;  %v1722_v3 = vmul.f32 %v3250_v54, %v3838_v62 }
 0x458   : > { %v3254_v41 = vpop.eup %3253  ;;  %v1720_v12 = vmul.f32 %v3252_v58, %v3813_v39  ;;  %v1731_v15 = vadd.f32 %v1730_v60, %v1729_v0  ;;  %v1742_v62 = vsel %vm1550_vm11, %v1721_v47, 0.0  ;;  %v1739_v39 = vsel %vm1550_vm11, %v1718_v5, 0.0 }
 0x459   : > { %v3256_v6 = vpop.eup %3255  ;;  %v1723_v11 = vmul.f32 %v3254_v41, %v3840_v63  ;;  %v1749_v17 = vsel %vm1550_vm11, %v1722_v3, 0.0 }
 0x45a   : > { %v1716_v7 = vmul.f32 %v3256_v6, %v3846_v1  ;;  %v1741_v1 = vsel %vm1550_vm11, %v1719_v4, 0.0  ;;  %v1748_v63 = vsel %vm1550_vm11, %v1720_v12, 0.0  ;;  %v1733_v20 = vadd.f32 %v1732_v34, %v1731_v15 }
 0x45b   : > { %v1744_v19 = vsel %vm1550_vm11, %v1723_v11, 0.0  ;;  %v1743_v22 = vadd.f32 %v1742_v62, %v1741_v1  ;;  %v1750_v18 = vadd.f32 %v1749_v17, %v1748_v63  ;;  %v2908_v62 = vld [vmem:[%s4103_s27] ss:$0 sm:$0xff] }
 0x45c   : > { %v3258_v10 = vpop.eup %3257  ;;  %v1737_v9 = vsel %vm1550_vm11, %v1716_v7, 0.0 }
 0x45d   : > { %v3260_v51 = vpop.eup %3259  ;;  %v1738_v16 = vadd.f32 %v1737_v9, %v1736_v14  ;;  %v1725_v38 = vmul.f32 %v3258_v10, %v3848_v2 }
 0x45e   : > { %v1724_v13 = vmul.f32 %v3260_v51, %v3854_v56  ;;  %v1745_v56 = vadd.f32 %v1744_v19, %v1743_v22  ;;  %v3311_v22 = vld [vmem:[#allocation2] sm:$0xff] }
 0x45f   : > { %v1740_v21 = vadd.f32 %v1739_v39, %v1738_v16  ;;  %v1746_v24 = vsel %vm1550_vm11, %v1725_v38, 0.0 }
 0x460   : > { %v3262_v23 = vpop.eup %3261  ;;  %v1751_v2 = vsel %vm1550_vm11, %v1724_v13, 0.0  ;;  %v1747_v30 = vadd.f32 %v1746_v24, %v1745_v56  ;;  %v3312_v24 = vld [vmem:[#allocation2 + $0x8] sm:$0xff] }
 0x461   : > { %v1726_v25 = vmul.f32 %v3262_v23, %v3860_v8  ;;  %v1826_v26 = vpack.c.bf16 %v1740_v21, %v1733_v20  ;;  %v1752_v27 = vadd.f32 %v1751_v2, %v1750_v18  ;;  %v3187_v8 = vld [vmem:[%s3527_s22 + $0x8] sm:$0xff]  }
 0x463   : > { %v1753_v29 = vsel %vm1550_vm11, %v1726_v25, 0.0  ;;  %3066 = vmatmul.mubr.msk.bf16.vlgmr.msra.gmra.mrb[28].mxu1 %vm1550_vm11, %v1826_v26  ;;  %v3313_v26 = vld [vmem:[#allocation2 + $0x10] sm:$0xff] }
 0x464   : > { %v1754_v31 = vadd.f32 %v1753_v29, %v1752_v27  ;;  %3076 = vmatpush3.bf16.msra.mxu1 %v3185_v35  ;;  %v3314_v29 = vld [vmem:[#allocation2 + $0x18] sm:$0xff] }
 0x465   : > { %3077 = vmatprep.subr.bf16.mxu1 %v3187_v8 }
 0x466   : > { %v1827_v32 = vpack.c.bf16 %v1754_v31, %v1747_v30 }
 0x468   : > { %3072 = vmatmul.mubr.msk.bf16.vlgmr.msra.gmra.mrb[16].mxu0 %vm1550_vm11, %v1827_v32  ;;  %3078 = vmatpush3.bf16.msra.mxu1 %v3187_v8 }
 0x469   : > { %3084 = vmatpush3.bf16.msra.mxu0 %v3186_v33 }
 0x46a   : > { %3085 = vmatprep.subr.bf16.mxu0 %v3188_v37 }
 0x46d   : > { %3086 = vmatpush3.bf16.msra.mxu0 %v3188_v37 }
 0x536   : > { %v1867_v36 = vpop.f32.mrb[28].mxu1 }
 0x537   : > { %v3067_v40 = vpop.f32.mrb[29].mxu1 }
 0x538   : > { %v1870_v42 = vpop.f32.mrb[30].mxu1 }
 0x539   : > { %v1918_v44 = vpack.c.bf16 %v1870_v42, %v1867_v36  ;;  %v3068_v45 = vpop.f32.mrb[31].mxu1 }
 0x53b   : > { %3079 = vmatprep.mubr.msk.bf16.mxu1 %vm966_vm6, %v1918_v44  ;;  %3087 = vmatprep.mubr.msk.bf16.mxu0 %vm966_vm6, %v1918_v44  ;;  %v1911_v46 = vpop.f32.mrb[16].mxu0 }
 0x53c   : > { %v3073_v43 = vpop.f32.mrb[17].mxu0 }
 0x53d   : > { %v1914_v49 = vpop.f32.mrb[18].mxu0 }
 0x53e   : > { %v1919_v50 = vpack.c.bf16 %v1914_v49, %v1911_v46  ;;  %v3074_v52 = vpop.f32.mrb[19].mxu0 }
 0x540   : > { %3080 = vmatmul.mubr.msk.bf16.vlgmr.msra.gmra.mrb[32].mxu1 %vm966_vm6, %v1919_v50  ;;  %3088 = vmatmul.mubr.msk.bf16.vlgmr.msra.gmra.mrb[20].mxu0 %vm966_vm6, %v1919_v50 }
 0x613   : > { %v3081_v54 = vpop.f32.mrb[32].mxu1  ;;  %v3089_v48 = vpop.f32.mrb[20].mxu0 }
 0x614   : > { %v1992_v57 = vadd.f32 %v3081_v54, %v2903_v53  ;;  %v1983_v58 = vpop.f32.mrb[33].mxu1  ;;  %v2055_v41 = vpop.f32.mrb[21].mxu0  ;;  %v2064_v17 = vadd.f32 %v3089_v48, %v2908_v62 }
 0x615   : > { %v1984_v59 = vadd.f32 %v2903_v53, %v1983_v58  ;;  %v3082_v61 = vpop.f32.mrb[34].mxu1  ;;  %v3090_v60 = vpop.f32.mrb[22].mxu0  ;;  %v2056_v38 = vadd.f32 %v2908_v62, %v2055_v41 }
 0x616   : > { %v2915_v6 = vmul.f32 -1.442695, %v1992_v57  ;;  %v1995_v55 = vadd.f32 %v3082_v61, %v2903_v53  ;;  %v1986_v0 = vpop.f32.mrb[35].mxu1  ;;  %v2058_v47 = vpop.f32.mrb[23].mxu0  ;;  %v2067_v39 = vadd.f32 %v3090_v60, %v2908_v62  ;;  %v3190_v61 = vld [vmem:[%s3549_s4 + $0x8] sm:$0xff]   ;;  %v3191_v60 = vld [vmem:[%s3560_s0] sm:$0xff]  }
 0x617   : > { %v2913_v3 = vmul.f32 -1.442695, %v1984_v59  ;;  %v1987_v28 = vadd.f32 %v2903_v53, %v1986_v0  ;;  %v2059_v19 = vadd.f32 %v2908_v62, %v2058_v47  ;;  %v3189_v59 = vld [vmem:[%s3549_s4] sm:$0xff]   ;;  %3099 = vmatprep.subr.bf16.mxu0 %v3191_v60 }
 0x618   : > { %3263 = vpow2.f32 %v2915_v6  ;;  %v2916_v4 = vmul.f32 -1.442695, %v1995_v55  ;;  %3091 = vmatprep.subr.bf16.mxu1 %v3189_v59  ;;  %v3192_v6 = vld [vmem:[%s3560_s0 + $0x8] sm:$0xff]   ;;  %3100 = vmatpush3.bf16.msra.mxu0 %v3191_v60 }
 0x619   : > { %3265 = vpow2.f32 %v2913_v3  ;;  %v2914_v5 = vmul.f32 -1.442695, %v1987_v28  ;;  %3092 = vmatpush3.bf16.msra.mxu1 %v3189_v59  ;;  %3101 = vmatprep.subr.bf16.mxu0 %v3192_v6 }
 0x61a   : > { %3267 = vpow2.f32 %v2916_v4  ;;  %3093 = vmatprep.subr.bf16.mxu1 %v3190_v61 }
 0x61b   : > { %3269 = vpow2.f32 %v2914_v5 }
 0x61c   : > { %3102 = vmatpush3.bf16.msra.mxu0 %v3192_v6 }
 0x61d   : > { %3094 = vmatpush3.bf16.msra.mxu1 %v3190_v61 }
 0x622   : > { %v3264_v7 = vpop.eup %3263 }
 0x623   : > { %v3266_v12 = vpop.eup %3265  ;;  %v2084_v14 = vadd.f32 1.0, %v3264_v7 }
 0x624   : > { %v3268_v15 = vpop.eup %3267  ;;  %v2082_v11 = vadd.f32 1.0, %v3266_v12 }
 0x625   : > { %v3270_v10 = vpop.eup %3269  ;;  %3271 = vrcp.f32 %v2084_v14  ;;  %v2085_v9 = vadd.f32 1.0, %v3268_v15 }
 0x626   : > { %3273 = vrcp.f32 %v2082_v11  ;;  %v2083_v51 = vadd.f32 1.0, %v3270_v10 }
 0x627   : > { %3275 = vrcp.f32 %v2085_v9  ;;  %v2917_v9 = vld [vmem:[%s4104_s23] ss:$0 sm:$0xff] }
 0x628   : > { %3277 = vrcp.f32 %v2083_v51 }
 0x62f   : > { %v3272_v16 = vpop.eup %3271 }
 0x630   : > { %v3274_v34 = vpop.eup %3273  ;;  %v2096_v1 = vmul.f32 %v3272_v16, %v2064_v17 }
 0x631   : > { %v3276_v13 = vpop.eup %3275  ;;  %v2094_v63 = vmul.f32 %v3274_v34, %v2056_v38  ;;  %v2918_v34 = vld [vmem:[%s4105_s21] ss:$0 sm:$0xff] }
 0x632   : > { %v3278_v20 = vpop.eup %3277  ;;  %v2097_v21 = vmul.f32 %v3276_v13, %v2067_v39  ;;  %v2100_v56 = vadd.f32 %v3313_v26, %v2096_v1  ;;  %v3194_v26 = vld [vmem:[%s3560_s0 + $0x18] sm:$0xff]  }
 0x633   : > { %v2095_v23 = vmul.f32 %v3278_v20, %v2059_v19  ;;  %v2098_v18 = vadd.f32 %v3311_v22, %v2094_v63 }
 0x634   : > { %v2101_v30 = vadd.f32 %v3314_v29, %v2097_v21  ;;  %v2108_v31 = vsel %vm966_vm6, %v2100_v56, 0.0 }
 0x635   : > { %v2102_v2 = vsel %vm966_vm6, %v2098_v18, 0.0  ;;  %v2099_v25 = vadd.f32 %v3312_v24, %v2095_v23 }
 0x636   : > { %2103 = vadd.xlane.f32.xlu1 %v2102_v2  ;;  %v2111_v32 = vsel %vm966_vm6, %v2101_v30, 0.0 }
 0x637   : > { %v2105_v27 = vsel %vm966_vm6, %v2099_v25, 0.0 }
 0x638   : > { %2106 = vadd.xlane.f32.xlu0 %v2105_v27 }
 0x63a   : > { %2109 = vadd.xlane.f32.xlu1 %v2108_v31 }
 0x63c   : > { %2112 = vadd.xlane.f32.xlu0 %v2111_v32 }
 0x6c3   : > { %v2104_v35 = vpop.xlane.xlu1 %2103 }
 0x6c4   : > { %v2115_v33 = vmul.f32 0.03125, %v2104_v35 }
 0x6c5   : > { %v2107_v8 = vpop.xlane.xlu0 %2106 }
 0x6c6   : > { %v2119_v37 = vsub.f32 %v2098_v18, %v2115_v33  ;;  %v2116_v36 = vmul.f32 0.03125, %v2107_v8 }
 0x6c7   : > { %v2110_v40 = vpop.xlane.xlu1 %2109 }
 0x6c8   : > { %v2120_v42 = vsub.f32 %v2099_v25, %v2116_v36  ;;  %v2117_v44 = vmul.f32 0.03125, %v2110_v40  ;;  %v2123_v45 = vmul.f32 %v2119_v37, %v2119_v37  ;;  %v3193_v25 = vld [vmem:[%s3560_s0 + $0x10] sm:$0xff]   ;;  %v3196_v40 = vld [vmem:[%s4106_s10 + $0x8] sm:$0xff]  }
 0x6c9   : > { %v2113_v46 = vpop.xlane.xlu0 %2112  ;;  %3103 = vmatprep.subr.bf16.mxu0 %v3193_v25 }
 0x6ca   : > { %v2121_v43 = vsub.f32 %v2100_v56, %v2117_v44  ;;  %v2118_v49 = vmul.f32 0.03125, %v2113_v46  ;;  %v2127_v50 = vsel %vm966_vm6, %v2123_v45, 0.0  ;;  %v2124_v52 = vmul.f32 %v2120_v42, %v2120_v42  ;;  %3104 = vmatpush3.bf16.msra.mxu0 %v3193_v25  ;;  %v3195_v56 = vld [vmem:[%s4106_s10] sm:$0xff]  }
 0x6cb   : > { %2128 = vadd.xlane.f32.xlu1 %v2127_v50  ;;  %3105 = vmatprep.subr.bf16.mxu0 %v3194_v26 }
 0x6cc   : > { %v2122_v53 = vsub.f32 %v2101_v30, %v2118_v49  ;;  %v2130_v54 = vsel %vm966_vm6, %v2124_v52, 0.0  ;;  %v2125_v48 = vmul.f32 %v2121_v43, %v2121_v43  ;;  %3111 = vmatprep.subr.bf16.mxu1 %v3195_v56  ;;  %v3198_v52 = vld [vmem:[%s3569_s20 + $0x8] sm:$0xff]  }
 0x6cd   : > { %2131 = vadd.xlane.f32.xlu0 %v2130_v54 }
 0x6ce   : > { %v2133_v57 = vsel %vm966_vm6, %v2125_v48, 0.0  ;;  %v2126_v58 = vmul.f32 %v2122_v53, %v2122_v53  ;;  %3106 = vmatpush3.bf16.msra.mxu0 %v3194_v26 }
 0x6cf   : > { %2134 = vadd.xlane.f32.xlu1 %v2133_v57 }
 0x6d0   : > { %v2136_v41 = vsel %vm966_vm6, %v2126_v58, 0.0 }
 0x6d1   : > { %2137 = vadd.xlane.f32.xlu0 %v2136_v41 }
 0x758   : > { %v2129_v55 = vpop.xlane.xlu1 %2128 }
 0x759   : > { %v2139_v0 = vmul.f32 0.03125, %v2129_v55 }
 0x75a   : > { %v2132_v47 = vpop.xlane.xlu0 %2131 }
 0x75b   : > { %v2143_v3 = vadd.f32 1e-05, %v2139_v0  ;;  %v2140_v28 = vmul.f32 0.03125, %v2132_v47 }
 0x75c   : > { %v2135_v4 = vpop.xlane.xlu1 %2134 }
 0x75d   : > { %3279 = vrsqrt.f32 %v2143_v3  ;;  %v2144_v5 = vadd.f32 1e-05, %v2140_v28  ;;  %v2141_v7 = vmul.f32 0.03125, %v2135_v4 }
 0x75e   : > { %v2138_v12 = vpop.xlane.xlu0 %2137 }
 0x75f   : > { %3281 = vrsqrt.f32 %v2144_v5  ;;  %v2145_v14 = vadd.f32 1e-05, %v2141_v7  ;;  %v2142_v15 = vmul.f32 0.03125, %v2138_v12 }
 0x761   : > { %3283 = vrsqrt.f32 %v2145_v14  ;;  %v2146_v11 = vadd.f32 1e-05, %v2142_v15 }
 0x763   : > { %3285 = vrsqrt.f32 %v2146_v11 }
 0x767   : > { %v3280_v10 = vpop.eup %3279 }
 0x768   : > { %v2151_v51 = vmul.f32 %v3280_v10, %v2119_v37 }
 0x769   : > { %v3282_v62 = vpop.eup %3281 }
 0x76a   : > { %v2152_v17 = vmul.f32 %v3282_v62, %v2120_v42  ;;  %v2162_v16 = vmul.f32 %v2917_v9, %v2151_v51  ;;  %v3197_v42 = vld [vmem:[%s3569_s20] sm:$0xff]  }
 0x76b   : > { %v3284_v38 = vpop.eup %3283  ;;  %v2934_v62 = vld [vmem:[%s860_s6] ss:$0 sm:$0xff] }
 0x76c   : > { %v2153_v1 = vmul.f32 %v3284_v38, %v2121_v43  ;;  %v2163_v39 = vmul.f32 %v2917_v9, %v2152_v17  ;;  %v3938_v20 = vadd.f32 %v2918_v34, %v2162_v16 }
 0x76d   : > { %v3286_v13 = vpop.eup %3285 }
 0x76e   : > { %v2164_v63 = vmul.f32 %v2917_v9, %v2153_v1  ;;  %v2154_v19 = vmul.f32 %v3286_v13, %v2122_v53  ;;  %v3940_v21 = vadd.f32 %v2918_v34, %v2163_v39  ;;  %v2929_v53 = vld [vmem:[%s852_s3] ss:$0 sm:$0xff] }
 0x770   : > { %v2165_v23 = vmul.f32 %v2917_v9, %v2154_v19  ;;  %v2177_v22 = vpack.c.bf16 %v3940_v21, %v3938_v20  ;;  %v3945_v18 = vadd.f32 %v2918_v34, %v2164_v63 }
 0x772   : > { %3095 = vmatprep.mubr.msk.bf16.mxu1 %vm966_vm6, %v2177_v22  ;;  %v3947_v2 = vadd.f32 %v2918_v34, %v2165_v23 }
 0x774   : > { %v2178_v24 = vpack.c.bf16 %v3947_v2, %v3945_v18 }
 0x776   : > { %3096 = vmatmul.mubr.msk.bf16.vlgmr.msra.gmra.mrb[36].mxu1 %vm966_vm6, %v2178_v24 }
 0x777   : > { %3112 = vmatpush3.bf16.msra.mxu1 %v3195_v56 }
 0x778   : > { %3113 = vmatprep.subr.bf16.mxu1 %v3196_v40 }
 0x77b   : > { %3114 = vmatpush3.bf16.msra.mxu1 %v3196_v40 }
 0x77c   : > { %3119 = vmatprep.subr.bf16.mxu1 %v3197_v42 }
 0x849   : > { %v3097_v27 = vpop.f32.mrb[36].mxu1 }
 0x84a   : > { %v2235_v29 = vpop.f32.mrb[37].mxu1  ;;  %v2252_v31 = vmax.f32 %v3097_v27, 0.0 }
 0x84b   : > { %v3098_v30 = vpop.f32.mrb[38].mxu1  ;;  %v2250_v33 = vmax.f32 %v2235_v29, 0.0 }
 0x84c   : > { %v2253_v32 = vmax.f32 %v3098_v30, 0.0  ;;  %v2238_v35 = vpop.f32.mrb[39].mxu1 }
 0x84d   : > { %v2251_v8 = vmax.f32 %v2238_v35, 0.0 }
 0x84e   : > { %v2255_v37 = vpack.c.bf16 %v2253_v32, %v2252_v31 }
 0x84f   : > { %v2254_v36 = vpack.c.bf16 %v2251_v8, %v2250_v33 }
 0x851   : > { %3107 = vmatprep.mubr.msk.bf16.mxu0 %vm971_vm7, %v2254_v36 }
 0x852   : > { %3108 = vmatmul.mubr.msk.bf16.vlgmr.msra.gmra.mrb[24].mxu0 %vm971_vm7, %v2255_v37 }
 0x925   : > { %v3109_v44 = vpop.f32.mrb[24].mxu0 }
 0x926   : > { %v2328_v45 = vpop.f32.mrb[25].mxu0 }
 0x927   : > { %v3110_v46 = vpop.f32.mrb[26].mxu0 }
 0x928   : > { %v2344_v43 = vpack.c.bf16 %v3110_v46, %v3109_v44  ;;  %v2331_v49 = vpop.f32.mrb[27].mxu0 }
 0x929   : > { %v2343_v50 = vpack.c.bf16 %v2331_v49, %v2328_v45 }
 0x92b   : > { %3115 = vmatprep.mubr.msk.bf16.mxu1 %vm966_vm6, %v2343_v50 }
 0x92c   : > { %3116 = vmatmul.mubr.msk.bf16.vlgmr.msra.gmra.mrb[40].mxu1 %vm966_vm6, %v2344_v43 }
 0x92d   : > { %3120 = vmatpush3.bf16.msra.mxu1 %v3197_v42  ;;  %3123 = vmatprep.mubr.msk.bf16.mxu1 %vm966_vm6, %v2343_v50 }
 0x92e   : > { %3121 = vmatprep.subr.bf16.mxu1 %v3198_v52 }
 0x931   : > { %3122 = vmatpush3.bf16.msra.mxu1 %v3198_v52 }
 0x934   : > { %3124 = vmatmul.mubr.msk.bf16.vlgmr.msra.gmra.mrb[44].mxu1 %vm966_vm6, %v2344_v43 }
 0x9ff   : > { %v3117_v54 = vpop.f32.mrb[40].mxu1 }
 0xa00   : > { %v2417_v48 = vadd.f32 %v3117_v54, %v2929_v53  ;;  %v2408_v57 = vpop.f32.mrb[41].mxu1 }
 0xa01   : > { %v2409_v58 = vadd.f32 %v2929_v53, %v2408_v57  ;;  %v3118_v41 = vpop.f32.mrb[42].mxu1 }
 0xa02   : > { %v2941_v59 = vmul.f32 -1.442695, %v2417_v48  ;;  %v2420_v61 = vadd.f32 %v3118_v41, %v2929_v53  ;;  %v2411_v60 = vpop.f32.mrb[43].mxu1 }
 0xa03   : > { %v2939_v6 = vmul.f32 -1.442695, %v2409_v58  ;;  %v2412_v55 = vadd.f32 %v2929_v53, %v2411_v60 }
 0xa04   : > { %3287 = vpow2.f32 %v2941_v59  ;;  %v2942_v0 = vmul.f32 -1.442695, %v2420_v61 }
 0xa05   : > { %3289 = vpow2.f32 %v2939_v6  ;;  %v2940_v47 = vmul.f32 -1.442695, %v2412_v55 }
 0xa06   : > { %3291 = vpow2.f32 %v2942_v0 }
 0xa07   : > { %3293 = vpow2.f32 %v2940_v47  ;;  %v3125_v3 = vpop.f32.mrb[44].mxu1 }
 0xa08   : > { %v2480_v28 = vpop.f32.mrb[45].mxu1  ;;  %v2489_v17 = vadd.f32 %v3125_v3, %v2934_v62 }
 0xa09   : > { %v3126_v4 = vpop.f32.mrb[46].mxu1  ;;  %v2481_v38 = vadd.f32 %v2934_v62, %v2480_v28 }
 0xa0a   : > { %v2483_v5 = vpop.f32.mrb[47].mxu1  ;;  %v2492_v39 = vadd.f32 %v3126_v4, %v2934_v62  ;;  %v2943_v4 = vld [vmem:[%s863_s12] ss:$0 sm:$0xff] }
 0xa0b   : > { %v2484_v19 = vadd.f32 %v2934_v62, %v2483_v5 }
 0xa0e   : > { %v3288_v7 = vpop.eup %3287 }
 0xa0f   : > { %v3290_v12 = vpop.eup %3289  ;;  %v2509_v14 = vadd.f32 1.0, %v3288_v7 }
 0xa10   : > { %v3292_v15 = vpop.eup %3291  ;;  %v2507_v11 = vadd.f32 1.0, %v3290_v12  ;;  %v2944_v12 = vld [vmem:[%s866_s11] ss:$0 sm:$0xff]  ;;  %s4108_s11 = sld [smem:[#allocation6_spill]] }
 0xa11   : > { %v3294_v10 = vpop.eup %3293  ;;  %3295 = vrcp.f32 %v2509_v14  ;;  %v2510_v9 = vadd.f32 1.0, %v3292_v15 }
 0xa12   : > { %3297 = vrcp.f32 %v2507_v11  ;;  %v2508_v51 = vadd.f32 1.0, %v3294_v10 }
 0xa13   : > { %3299 = vrcp.f32 %v2510_v9 }
 0xa14   : > { %3301 = vrcp.f32 %v2508_v51 }
 0xa16   : > { %p2945_p6 = scmp.ne.s32.totalorder %s4108_s11, 1 }
 0xa1b   : > { %v3296_v16 = vpop.eup %3295 }
 0xa1c   : > { %v3298_v34 = vpop.eup %3297  ;;  %v2521_v1 = vmul.f32 %v3296_v16, %v2489_v17 }
 0xa1d   : > { %v3300_v13 = vpop.eup %3299  ;;  %v2519_v63 = vmul.f32 %v3298_v34, %v2481_v38 }
 0xa1e   : > { %v3302_v23 = vpop.eup %3301  ;;  %v2522_v22 = vmul.f32 %v3300_v13, %v2492_v39  ;;  %v2525_v27 = vadd.f32 %v2521_v1, %v3945_v18 }
 0xa1f   : > { %v2520_v24 = vmul.f32 %v3302_v23, %v2484_v19  ;;  %v2523_v25 = vadd.f32 %v2519_v63, %v3938_v20 }
 0xa20   : > { %v2526_v30 = vadd.f32 %v2522_v22, %v3947_v2  ;;  %v2533_v31 = vsel %vm966_vm6, %v2525_v27, 0.0 }
 0xa21   : > { %v2527_v26 = vsel %vm966_vm6, %v2523_v25, 0.0  ;;  %v2524_v56 = vadd.f32 %v2520_v24, %v3940_v21 }
 0xa22   : > { %2528 = vadd.xlane.f32.xlu1 %v2527_v26  ;;  %v2536_v32 = vsel %vm966_vm6, %v2526_v30, 0.0 }
 0xa23   : > { %v2530_v29 = vsel %vm966_vm6, %v2524_v56, 0.0 }
 0xa24   : > { %2531 = vadd.xlane.f32.xlu0 %v2530_v29 }
 0xa26   : > { %2534 = vadd.xlane.f32.xlu1 %v2533_v31 }
 0xa28   : > { %2537 = vadd.xlane.f32.xlu0 %v2536_v32 }
 0xaaf   : > { %v2529_v35 = vpop.xlane.xlu1 %2528 }
 0xab0   : > { %v2539_v20 = vmul.f32 0.03125, %v2529_v35 }
 0xab1   : > { %v2532_v33 = vpop.xlane.xlu0 %2531 }
 0xab2   : > { %v2543_v8 = vsub.f32 %v2523_v25, %v2539_v20  ;;  %v2540_v37 = vmul.f32 0.03125, %v2532_v33 }
 0xab3   : > { %v2535_v21 = vpop.xlane.xlu1 %2534 }
 0xab4   : > { %v2544_v36 = vsub.f32 %v2524_v56, %v2540_v37  ;;  %v2541_v18 = vmul.f32 0.03125, %v2535_v21  ;;  %v2547_v40 = vmul.f32 %v2543_v8, %v2543_v8 }
 0xab5   : > { %v2538_v42 = vpop.xlane.xlu0 %2537 }
 0xab6   : > { %v2545_v44 = vsub.f32 %v2525_v27, %v2541_v18  ;;  %v2542_v45 = vmul.f32 0.03125, %v2538_v42  ;;  %v2551_v2 = vsel %vm966_vm6, %v2547_v40, 0.0  ;;  %v2548_v46 = vmul.f32 %v2544_v36, %v2544_v36 }
 0xab7   : > { %2552 = vadd.xlane.f32.xlu1 %v2551_v2 }
 0xab8   : > { %v2546_v43 = vsub.f32 %v2526_v30, %v2542_v45  ;;  %v2554_v49 = vsel %vm966_vm6, %v2548_v46, 0.0  ;;  %v2549_v50 = vmul.f32 %v2545_v44, %v2545_v44 }
 0xab9   : > { %2555 = vadd.xlane.f32.xlu0 %v2554_v49 }
 0xaba   : > { %v2557_v52 = vsel %vm966_vm6, %v2549_v50, 0.0  ;;  %v2550_v53 = vmul.f32 %v2546_v43, %v2546_v43 }
 0xabb   : > { %2558 = vadd.xlane.f32.xlu1 %v2557_v52 }
 0xabc   : > { %v2560_v54 = vsel %vm966_vm6, %v2550_v53, 0.0 }
 0xabd   : > { %2561 = vadd.xlane.f32.xlu0 %v2560_v54 }
 0xb44   : > { %v2553_v48 = vpop.xlane.xlu1 %2552 }
 0xb45   : > { %v2563_v57 = vmul.f32 0.03125, %v2553_v48 }
 0xb46   : > { %v2556_v58 = vpop.xlane.xlu0 %2555 }
 0xb47   : > { %v2567_v41 = vadd.f32 1e-05, %v2563_v57  ;;  %v2564_v59 = vmul.f32 0.03125, %v2556_v58 }
 0xb48   : > { %v2559_v61 = vpop.xlane.xlu1 %2558 }
 0xb49   : > { %3303 = vrsqrt.f32 %v2567_v41  ;;  %v2568_v60 = vadd.f32 1e-05, %v2564_v59  ;;  %v2565_v6 = vmul.f32 0.03125, %v2559_v61 }
 0xb4a   : > { %v2562_v55 = vpop.xlane.xlu0 %2561 }
 0xb4b   : > { %3305 = vrsqrt.f32 %v2568_v60  ;;  %v2569_v0 = vadd.f32 1e-05, %v2565_v6  ;;  %v2566_v47 = vmul.f32 0.03125, %v2562_v55 }
 0xb4d   : > { %3307 = vrsqrt.f32 %v2569_v0  ;;  %v2570_v3 = vadd.f32 1e-05, %v2566_v47 }
 0xb4f   : > { %3309 = vrsqrt.f32 %v2570_v3 }
 0xb53   : > { %v3304_v28 = vpop.eup %3303 }
 0xb54   : > { %v2575_v5 = vmul.f32 %v3304_v28, %v2543_v8 }
 0xb55   : > { %v3306_v7 = vpop.eup %3305 }
 0xb56   : > { %v2586_v14 = vmul.f32 %v2943_v4, %v2575_v5  ;;  %v2576_v15 = vmul.f32 %v3306_v7, %v2544_v36 }
 0xb57   : > { %v3308_v11 = vpop.eup %3307 }
 0xb58   : > { %v2597_v10 = vadd.f32 %v2944_v12, %v2586_v14  ;;  %v2587_v9 = vmul.f32 %v2943_v4, %v2576_v15  ;;  %v2577_v51 = vmul.f32 %v3308_v11, %v2545_v44 }
 0xb59   : > { %v3310_v62 = vpop.eup %3309 }
 0xb5a   : > { %2601 = vst.msk [vmem:[#allocation2] sm:$0xff] %vm966_vm6, %v2597_v10  ;;  %v2598_v17 = vadd.f32 %v2944_v12, %v2587_v9  ;;  %v2588_v16 = vmul.f32 %v2943_v4, %v2577_v51  ;;  %v2578_v38 = vmul.f32 %v3310_v62, %v2546_v43  ;;  %2608 = sbr.rel (%p2945_p6) target bundleno = 2913 (0xb61), region = 100  ;;  %2609 = vst.msk [vmem:[#allocation3] sm:$0xff] (!%p2945_p6), %vm966_vm6, %v2597_v10 }
 0xb5c   : > { %2602 = vst.msk [vmem:[#allocation2 + $0x8] sm:$0xff] %vm966_vm6, %v2598_v17  ;;  %v2599_v34 = vadd.f32 %v2944_v12, %v2588_v16  ;;  %v2589_v1 = vmul.f32 %v2943_v4, %v2578_v38  ;;  %2610 = vst.msk [vmem:[#allocation3 + $0x8] sm:$0xff] (!%p2945_p6), %vm966_vm6, %v2598_v17 }
 0xb5e   : > { %2603 = vst.msk [vmem:[#allocation2 + $0x10] sm:$0xff] %vm966_vm6, %v2599_v34  ;;  %v2600_v39 = vadd.f32 %v2944_v12, %v2589_v1  ;;  %2611 = vst.msk [vmem:[#allocation3 + $0x10] sm:$0xff] (!%p2945_p6), %vm966_vm6, %v2599_v34 }
 0xb60   : > { %2604 = vst.msk [vmem:[#allocation2 + $0x18] sm:$0xff] %vm966_vm6, %v2600_v39  ;;  %2612 = vst.msk [vmem:[#allocation3 + $0x18] sm:$0xff] (!%p2945_p6), %vm966_vm6, %v2600_v39 }
 0xb61 PF: > { %s4109_s12 = sld [smem:[#allocation8_spill]]  ;;  %s3381_s18 = smov [#allocation3]  }
 0xb62   : > { %s2622_s30 = sshll.u32 %s3381_s18, 4  ;;  %s2623_s30 = int_to_ptr.vmem [resolvable:$true] %s2622_s30 }
 0xb63   : > { %s3315_s27 = scalar_lea.vmem %s2623_s30, 512  ;;  %p3322_p11 = scmp.lt.s32.totalorder %s2623_s30, %s2623_s30 }
 0xb64   : > { %p3316_p8 = scmp.ne.s32.totalorder %s2623_s30, %s3315_s27  ;;  %p3323_p12 = scmp.lt.s32.totalorder %s3315_s27, %s3315_s27 }
 0xb66   : > { %p3324_p13 = por %p3323_p12, %p3322_p11 }
 0xb67   : > { %s4110_s19 = sadd.s32 4294967295, %s4109_s12  }
 0xb68   : > { %p4007_p7 = scmp.eq.s32.totalorder %s4110_s19, 1 }
 0xb6a   : > { %p3317_p9 = pnand %p3316_p8, %p4007_p7 }
 0xb6c   : > { %p3318_p10 = pneg %p3317_p9 }
 0xb6e   : > { %p3325_p0 = pnand %p3324_p13, %p3318_p10 }
 0xb70   : > { %3328 = shalt.err (!%p3325_p0)
}
 0xb71   : > { %s4112_s23 = sld [smem:[#allocation23_spill]] }
 0xb77   : > { %s3329_s29 = scalar_lea.hbm %s4112_s23, 512 }
 0xb78   : > { %p3330_p1 = scmp.ne.s32.totalorder %s4112_s23, %s3329_s29  ;;  %p3335_p4 = scmp.lt.u32.totalorder %s3329_s29, %s4112_s23 }
 0xb7a   : > { %p3331_p2 = pnand %p3330_p1, %p4007_p7 }
 0xb7c   : > { %p3332_p3 = pneg %p3331_p2 }
 0xb7e   : > { %p3337_p5 = pnand %p3335_p4, %p3332_p3 }
 0xb80   : > { %3340 = shalt.err (!%p3337_p5)
}
 0xb81   : > { %s3382_s24 = smov 128   ;;  %s3383_s3 = smov 8  }
 0xb82   : > { %3129 = dma.vmem_to_hbm [thread:$0]  (%p4007_p7), %s2623_s30, 512, %s4112_s23, [#allocation4], %s3382_s24, %s3382_s24, %s3383_s3  }
 0xb83   : > { %3354 = dma.done.wait (%p4007_p7), [#allocation4], 512  }
 0xb84   : > { %3356 = vsyncadd (%p4007_p7), [#allocation4], 4294966784 }
 0xb85 PF: > { %s4113_s17 = sld [smem:[#allocation8_spill]]  ;;  %s4114_s27 = sld [smem:[#allocation7_spill]] }
 0xb86   : > { %s4115_s28 = sld [smem:[#allocation9_spill]] }
 0xb8b   : > { %s29_s29 = sadd.s32 1, %s4113_s17  }
 0xb8c   : > { %p26_p6 = scmp.ge.s32.totalorder %s29_s29, 4  }
 0xb8e   :  { %28 = sbr.rel (!%p26_p6) target bundleno = 15 (0xf), region = 179 }
 0xb95   :  { %2638 = vsyncpa [#allocation4], 1 }
 0xb96   :  { %2640 = vsyncpa [#allocation4 + $0x1], 1 }

</bundles_post_ra>
